<compile_context>
chip_gen: v6e
topology: v6e:2x2x1
jax: 0.10.0
libtpu: 0.0.40
codegen_flags: <defaults>
</compile_context>

<pallas_src>
import jax
import jax.numpy as jnp
from jax.experimental import pallas as pl
from jax.experimental.pallas import tpu as pltpu

FEAT_IN   = 64      # LSTM input_size  (RULSTM uses 1024; scaled down for this demo run)
HIDDEN    = 32      # LSTM hidden_size
NUM_CLASS = 10
LANE      = 128     # classifier output padded to this many lanes (lane-dense store)


# ----------------------------------------- fused kernel -----------------------------------------
def _make_lstm_kernel(return_context):
    """Kernel factory: one program handles a (Bt, S, D) batch tile end-to-end."""

    def kernel(x_ref, wih_ref, whh_ref, bg_ref, wcls_ref, bcls_ref, y_ref, *ctx_out):
        Bt, S, D = x_ref.shape
        H = whh_ref.shape[0]
        Cp = wcls_ref.shape[1]

        # (1) input projection for ALL (batch, time) rows at once: one (Bt*S, D) @ (D, 4H) matmul.
        x2d = x_ref[...].reshape(Bt * S, D)
        gx = jnp.dot(x2d, wih_ref[...], preferred_element_type=jnp.float32) + bg_ref[...]
        gx = gx.reshape(Bt, S, 4 * H)                       # values stay in vregs (no scratch)

        whh = whh_ref[...]                                  # hoisted out of the loop

        def sig(v):
            # EUP exp + approximate EUP reciprocal (no VALU divide on the serial chain).
            return pl.reciprocal(1.0 + jnp.exp(-v), approx=True)

        # (2) sequential LSTM recurrence (PyTorch gate order i, f, g, o); static Python loop
        #     over the small static S, h/c carried as (Bt, H) values.
        h = jnp.zeros((Bt, H), jnp.float32)
        c = jnp.zeros((Bt, H), jnp.float32)
        hs_steps = []
        for t in range(S):                                   # static trip count
            g = gx[:, t, :] + jnp.dot(h, whh, preferred_element_type=jnp.float32)  # (Bt, 4H)
            i_g = sig(g[:, 0 * H:1 * H])
            f_g = sig(g[:, 1 * H:2 * H])
            g_g = jnp.tanh(g[:, 2 * H:3 * H])
            o_g = sig(g[:, 3 * H:4 * H])
            c = f_g * c + i_g * g_g
            h = o_g * jnp.tanh(c)
            hs_steps.append(h)
        hs = jnp.stack(hs_steps, axis=1)                     # (Bt, S, H)

        # (3) classifier on every (batch, time) row with one (Bt*S, H) @ (H, 128) matmul;
        #     lane-dense (128-wide) unmasked store, sliced to NUM_CLASS outside the kernel.
        y = (jnp.dot(hs.reshape(Bt * S, H), wcls_ref[...], preferred_element_type=jnp.float32)
             + bcls_ref[...])
        y_ref[...] = y.reshape(Bt, S, Cp)

        if return_context:                                   # only materialized when requested
            ctx_out[0][...] = hs

    return kernel


# -------------------------------------------- wrapper --------------------------------------------
def single_lstm_forward(inputs, params, return_context=False, batch_tile=None):
    """inputs: (B, S, FEAT_IN) f32 -> y: (B, S, NUM_CLASS) (and lstm_out if return_context)."""
    B, S, D = inputs.shape
    H = params["w_hh_t"].shape[0]
    C = params["w_cls_t"].shape[1]
    Cp = max(LANE, pl.cdiv(C, LANE) * LANE)                  # lane-dense classifier width

    # Whole batch in one program by default (no per-grid-step overhead on single-TC v5e/v6e).
    # On v7x pass batch_tile=B//2 so the "parallel" axis feeds both TensorCores.
    bt = B if batch_tile is None else batch_tile
    assert B % bt == 0, "batch must be divisible by batch_tile"

    # Pad classifier weights/bias to 128 lanes so the logits store is unmasked.
    wcls_pad = jnp.zeros((H, Cp), jnp.float32).at[:, :C].set(params["w_cls_t"])
    bcls_pad = jnp.zeros((1, Cp), jnp.float32).at[:, :C].set(params["b_cls"])

    out_specs = [pl.BlockSpec((bt, S, Cp), lambda g: (g, 0, 0))]
    out_shape = [jax.ShapeDtypeStruct((B, S, Cp), jnp.float32)]
    if return_context:
        out_specs.append(pl.BlockSpec((bt, S, H), lambda g: (g, 0, 0)))
        out_shape.append(jax.ShapeDtypeStruct((B, S, H), jnp.float32))

    outs = pl.pallas_call(
        _make_lstm_kernel(return_context),
        grid=(B // bt,),
        in_specs=[
            pl.BlockSpec((bt, S, D), lambda g: (g, 0, 0)),   # x, batch tile per program
            pl.BlockSpec((D, 4 * H), lambda g: (0, 0)),      # W_ih^T (grid-invariant)
            pl.BlockSpec((H, 4 * H), lambda g: (0, 0)),      # W_hh^T
            pl.BlockSpec((1, 4 * H), lambda g: (0, 0)),      # bias_ih + bias_hh
            pl.BlockSpec((H, Cp), lambda g: (0, 0)),         # classifier W^T (lane-padded)
            pl.BlockSpec((1, Cp), lambda g: (0, 0)),         # classifier bias (lane-padded)
        ],
        out_specs=out_specs,
        out_shape=out_shape,
        compiler_params=pltpu.CompilerParams(dimension_semantics=("parallel",)),
    )(inputs, params["w_ih_t"], params["w_hh_t"], params["b_gates"], wcls_pad, bcls_pad)

    y = outs[0][:, :, :C]                                    # drop lane padding outside the kernel
    if return_context:
        return y, outs[1]
    return y


# ------------------------------------- pure-JAX reference -------------------------------------
def single_lstm_forward_ref(inputs, params):
    B, S, _ = inputs.shape
    H = params["w_hh_t"].shape[0]
    h = jnp.zeros((B, H), jnp.float32)
    c = jnp.zeros((B, H), jnp.float32)
    hs = []
    for t in range(S):
        g = (inputs[:, t, :] @ params["w_ih_t"] + params["b_gates"][0]
             + h @ params["w_hh_t"])
        i_g = jax.nn.sigmoid(g[:, 0 * H:1 * H])
        f_g = jax.nn.sigmoid(g[:, 1 * H:2 * H])
        g_g = jnp.tanh(g[:, 2 * H:3 * H])
        o_g = jax.nn.sigmoid(g[:, 3 * H:4 * H])
        c = f_g * c + i_g * g_g
        h = o_g * jnp.tanh(c)
        hs.append(h)
    hs = jnp.stack(hs, axis=1)                               # (B, S, H)
    y = hs @ params["w_cls_t"] + params["b_cls"]
    return y, hs


# -------------------------------------------- params --------------------------------------------
def init_params(key):
    ks = jax.random.split(key, 6)
    k_lstm = 1.0 / (HIDDEN ** 0.5)          # PyTorch default LSTM init: U(-1/sqrt(H), 1/sqrt(H))
    k_cls = 1.0 / (HIDDEN ** 0.5)           # PyTorch default Linear init
    return dict(
        w_ih_t=jax.random.uniform(ks[0], (FEAT_IN, 4 * HIDDEN), jnp.float32, -k_lstm, k_lstm),
        w_hh_t=jax.random.uniform(ks[1], (HIDDEN, 4 * HIDDEN), jnp.float32, -k_lstm, k_lstm),
        b_gates=(jax.random.uniform(ks[2], (1, 4 * HIDDEN), jnp.float32, -k_lstm, k_lstm)
                 + jax.random.uniform(ks[3], (1, 4 * HIDDEN), jnp.float32, -k_lstm, k_lstm)),
        w_cls_t=jax.random.uniform(ks[4], (HIDDEN, NUM_CLASS), jnp.float32, -k_cls, k_cls),
        b_cls=jax.random.uniform(ks[5], (1, NUM_CLASS), jnp.float32, -k_cls, k_cls),
    )


if __name__ == "__main__":
    key = jax.random.PRNGKey(0)
    k_in, k_par = jax.random.split(key)
    B, S = 2, 8
    inputs = jax.random.normal(k_in, (B, S, FEAT_IN), jnp.float32)
    params = init_params(k_par)

    # Default path (return_context=False): logits only.
    y = jax.block_until_ready(single_lstm_forward(inputs, params))
    assert y.shape == (B, S, NUM_CLASS)

    # Context path (return_context=True): logits + lstm_out.
    y_ctx, hs_ctx = single_lstm_forward(inputs, params, return_context=True)
    y_ctx = jax.block_until_ready(y_ctx)
    hs_ctx = jax.block_until_ready(hs_ctx)
    assert y_ctx.shape == (B, S, NUM_CLASS) and hs_ctx.shape == (B, S, HIDDEN)

    # Cross-check against a pure-JAX LSTM reference.  Tolerance absorbs MXU default-precision f32
    # matmuls and the EUP approximate reciprocal in the in-kernel sigmoid, while still catching
    # gate-order / recurrence bugs (which produce O(0.1) errors).
    y_ref, hs_ref = single_lstm_forward_ref(inputs, params)
    err = float(jnp.max(jnp.abs(y - y_ref)))
    err_ctx = float(jnp.max(jnp.abs(hs_ctx - hs_ref)))
    if err > 2e-2 or err_ctx > 2e-2:
        raise AssertionError(f"kernel/reference mismatch: logits err={err}, context err={err_ctx}")
    print("KERNEL_OK")
</pallas_src>

<mosaic_0001>
module attributes {stable_mosaic.version = 11 : i64} {
  func.func @kernel(%arg0: i32, %arg1: memref<2x8x64xf32, #tpu.memory_space<vmem>>, %arg2: memref<64x128xf32, #tpu.memory_space<vmem>>, %arg3: memref<32x128xf32, #tpu.memory_space<vmem>>, %arg4: memref<1x128xf32, #tpu.memory_space<vmem>>, %arg5: memref<32x128xf32, #tpu.memory_space<vmem>>, %arg6: memref<1x128xf32, #tpu.memory_space<vmem>>, %arg7: memref<2x8x128xf32, #tpu.memory_space<vmem>>) attributes {dimension_semantics = [#tpu.dimension_semantics<parallel>], iteration_bounds = array<i64: 1>, scalar_prefetch = 0 : i64, scratch_operands = 0 : i64, tpu.core_type = #tpu.core_type<tc>, window_params = [{transform_indices = @transform_0, window_bounds = array<i64: 2, 8, 64>}, {pipeline_mode = #tpu.pipeline_mode<synchronous>, transform_indices = @transform_1, window_bounds = array<i64: 64, 128>}, {pipeline_mode = #tpu.pipeline_mode<synchronous>, transform_indices = @transform_2, window_bounds = array<i64: 32, 128>}, {pipeline_mode = #tpu.pipeline_mode<synchronous>, transform_indices = @transform_3, window_bounds = array<i64: 1, 128>}, {pipeline_mode = #tpu.pipeline_mode<synchronous>, transform_indices = @transform_4, window_bounds = array<i64: 32, 128>}, {pipeline_mode = #tpu.pipeline_mode<synchronous>, transform_indices = @transform_5, window_bounds = array<i64: 1, 128>}, {transform_indices = @transform_6, window_bounds = array<i64: 2, 8, 128>}]} {
    %c0 = arith.constant 0 : index
    %c0_0 = arith.constant 0 : index
    %c0_1 = arith.constant 0 : index
    %0 = vector.load %arg1[%c0, %c0_0, %c0_1] : memref<2x8x64xf32, #tpu.memory_space<vmem>>, vector<2x8x64xf32>
    %1 = vector.shape_cast %0 : vector<2x8x64xf32> to vector<16x64xf32>
    %c0_2 = arith.constant 0 : index
    %c0_3 = arith.constant 0 : index
    %2 = vector.load %arg2[%c0_2, %c0_3] : memref<64x128xf32, #tpu.memory_space<vmem>>, vector<64x128xf32>
    %cst = arith.constant dense<0.000000e+00> : vector<16x128xf32>
    %3 = tpu.matmul %1, %2, %cst {dimension_numbers = #tpu.dot_dimension_numbers<[1], [0], [0], [1], [0, 0, 1, 1], [], []>} : vector<16x64xf32>, vector<64x128xf32>, vector<16x128xf32> -> vector<16x128xf32>
    %c0_4 = arith.constant 0 : index
    %c0_5 = arith.constant 0 : index
    %4 = vector.load %arg4[%c0_4, %c0_5] : memref<1x128xf32, #tpu.memory_space<vmem>>, vector<1x128xf32>
    %5 = vector.broadcast %4 : vector<1x128xf32> to vector<16x128xf32>
    %6 = arith.addf %3, %5 : vector<16x128xf32>
    %7 = vector.shape_cast %6 : vector<16x128xf32> to vector<2x8x128xf32>
    %c0_6 = arith.constant 0 : index
    %c0_7 = arith.constant 0 : index
    %8 = vector.load %arg3[%c0_6, %c0_7] : memref<32x128xf32, #tpu.memory_space<vmem>>, vector<32x128xf32>
    %cst_8 = arith.constant 0.000000e+00 : f32
    %9 = vector.broadcast %cst_8 : f32 to vector<2x32xf32>
    %cst_9 = arith.constant 0.000000e+00 : f32
    %10 = vector.broadcast %cst_9 : f32 to vector<2x32xf32>
    %11 = vector.extract_strided_slice %7 {offsets = [0, 0, 0], sizes = [2, 1, 128], strides = [1, 1, 1]} : vector<2x8x128xf32> to vector<2x1x128xf32>
    %12 = vector.shape_cast %11 : vector<2x1x128xf32> to vector<2x128xf32>
    %cst_10 = arith.constant dense<0.000000e+00> : vector<2x128xf32>
    %13 = tpu.matmul %9, %8, %cst_10 {dimension_numbers = #tpu.dot_dimension_numbers<[1], [0], [0], [1], [0, 0, 1, 1], [], []>} : vector<2x32xf32>, vector<32x128xf32>, vector<2x128xf32> -> vector<2x128xf32>
    %14 = arith.addf %12, %13 : vector<2x128xf32>
    %15 = vector.extract_strided_slice %14 {offsets = [0, 0], sizes = [2, 32], strides = [1, 1]} : vector<2x128xf32> to vector<2x32xf32>
    %cst_11 = arith.constant 0.000000e+00 : f32
    %16 = vector.broadcast %cst_11 : f32 to vector<2x32xf32>
    %17 = arith.subf %16, %15 : vector<2x32xf32>
    %18 = math.exp %17 : vector<2x32xf32>
    %cst_12 = arith.constant 1.000000e+00 : f32
    %19 = vector.broadcast %cst_12 : f32 to vector<2x32xf32>
    %20 = arith.addf %19, %18 : vector<2x32xf32>
    %21 = tpu.reciprocal %20 {approx = true} : vector<2x32xf32> -> vector<2x32xf32>
    %22 = vector.extract_strided_slice %14 {offsets = [0, 32], sizes = [2, 32], strides = [1, 1]} : vector<2x128xf32> to vector<2x32xf32>
    %cst_13 = arith.constant 0.000000e+00 : f32
    %23 = vector.broadcast %cst_13 : f32 to vector<2x32xf32>
    %24 = arith.subf %23, %22 : vector<2x32xf32>
    %25 = math.exp %24 : vector<2x32xf32>
    %cst_14 = arith.constant 1.000000e+00 : f32
    %26 = vector.broadcast %cst_14 : f32 to vector<2x32xf32>
    %27 = arith.addf %26, %25 : vector<2x32xf32>
    %28 = tpu.reciprocal %27 {approx = true} : vector<2x32xf32> -> vector<2x32xf32>
    %29 = vector.extract_strided_slice %14 {offsets = [0, 64], sizes = [2, 32], strides = [1, 1]} : vector<2x128xf32> to vector<2x32xf32>
    %30 = math.tanh %29 : vector<2x32xf32>
    %31 = vector.extract_strided_slice %14 {offsets = [0, 96], sizes = [2, 32], strides = [1, 1]} : vector<2x128xf32> to vector<2x32xf32>
    %cst_15 = arith.constant 0.000000e+00 : f32
    %32 = vector.broadcast %cst_15 : f32 to vector<2x32xf32>
    %33 = arith.subf %32, %31 : vector<2x32xf32>
    %34 = math.exp %33 : vector<2x32xf32>
    %cst_16 = arith.constant 1.000000e+00 : f32
    %35 = vector.broadcast %cst_16 : f32 to vector<2x32xf32>
    %36 = arith.addf %35, %34 : vector<2x32xf32>
    %37 = tpu.reciprocal %36 {approx = true} : vector<2x32xf32> -> vector<2x32xf32>
    %38 = arith.mulf %28, %10 : vector<2x32xf32>
    %39 = arith.mulf %21, %30 : vector<2x32xf32>
    %40 = arith.addf %38, %39 : vector<2x32xf32>
    %41 = math.tanh %40 : vector<2x32xf32>
    %42 = arith.mulf %37, %41 : vector<2x32xf32>
    %43 = vector.extract_strided_slice %7 {offsets = [0, 1, 0], sizes = [2, 1, 128], strides = [1, 1, 1]} : vector<2x8x128xf32> to vector<2x1x128xf32>
    %44 = vector.shape_cast %43 : vector<2x1x128xf32> to vector<2x128xf32>
    %cst_17 = arith.constant dense<0.000000e+00> : vector<2x128xf32>
    %45 = tpu.matmul %42, %8, %cst_17 {dimension_numbers = #tpu.dot_dimension_numbers<[1], [0], [0], [1], [0, 0, 1, 1], [], []>} : vector<2x32xf32>, vector<32x128xf32>, vector<2x128xf32> -> vector<2x128xf32>
    %46 = arith.addf %44, %45 : vector<2x128xf32>
    %47 = vector.extract_strided_slice %46 {offsets = [0, 0], sizes = [2, 32], strides = [1, 1]} : vector<2x128xf32> to vector<2x32xf32>
    %cst_18 = arith.constant 0.000000e+00 : f32
    %48 = vector.broadcast %cst_18 : f32 to vector<2x32xf32>
    %49 = arith.subf %48, %47 : vector<2x32xf32>
    %50 = math.exp %49 : vector<2x32xf32>
    %cst_19 = arith.constant 1.000000e+00 : f32
    %51 = vector.broadcast %cst_19 : f32 to vector<2x32xf32>
    %52 = arith.addf %51, %50 : vector<2x32xf32>
    %53 = tpu.reciprocal %52 {approx = true} : vector<2x32xf32> -> vector<2x32xf32>
    %54 = vector.extract_strided_slice %46 {offsets = [0, 32], sizes = [2, 32], strides = [1, 1]} : vector<2x128xf32> to vector<2x32xf32>
    %cst_20 = arith.constant 0.000000e+00 : f32
    %55 = vector.broadcast %cst_20 : f32 to vector<2x32xf32>
    %56 = arith.subf %55, %54 : vector<2x32xf32>
    %57 = math.exp %56 : vector<2x32xf32>
    %cst_21 = arith.constant 1.000000e+00 : f32
    %58 = vector.broadcast %cst_21 : f32 to vector<2x32xf32>
    %59 = arith.addf %58, %57 : vector<2x32xf32>
    %60 = tpu.reciprocal %59 {approx = true} : vector<2x32xf32> -> vector<2x32xf32>
    %61 = vector.extract_strided_slice %46 {offsets = [0, 64], sizes = [2, 32], strides = [1, 1]} : vector<2x128xf32> to vector<2x32xf32>
    %62 = math.tanh %61 : vector<2x32xf32>
    %63 = vector.extract_strided_slice %46 {offsets = [0, 96], sizes = [2, 32], strides = [1, 1]} : vector<2x128xf32> to vector<2x32xf32>
    %cst_22 = arith.constant 0.000000e+00 : f32
    %64 = vector.broadcast %cst_22 : f32 to vector<2x32xf32>
    %65 = arith.subf %64, %63 : vector<2x32xf32>
    %66 = math.exp %65 : vector<2x32xf32>
    %cst_23 = arith.constant 1.000000e+00 : f32
    %67 = vector.broadcast %cst_23 : f32 to vector<2x32xf32>
    %68 = arith.addf %67, %66 : vector<2x32xf32>
    %69 = tpu.reciprocal %68 {approx = true} : vector<2x32xf32> -> vector<2x32xf32>
    %70 = arith.mulf %60, %40 : vector<2x32xf32>
    %71 = arith.mulf %53, %62 : vector<2x32xf32>
    %72 = arith.addf %70, %71 : vector<2x32xf32>
    %73 = math.tanh %72 : vector<2x32xf32>
    %74 = arith.mulf %69, %73 : vector<2x32xf32>
    %75 = vector.extract_strided_slice %7 {offsets = [0, 2, 0], sizes = [2, 1, 128], strides = [1, 1, 1]} : vector<2x8x128xf32> to vector<2x1x128xf32>
    %76 = vector.shape_cast %75 : vector<2x1x128xf32> to vector<2x128xf32>
    %cst_24 = arith.constant dense<0.000000e+00> : vector<2x128xf32>
    %77 = tpu.matmul %74, %8, %cst_24 {dimension_numbers = #tpu.dot_dimension_numbers<[1], [0], [0], [1], [0, 0, 1, 1], [], []>} : vector<2x32xf32>, vector<32x128xf32>, vector<2x128xf32> -> vector<2x128xf32>
    %78 = arith.addf %76, %77 : vector<2x128xf32>
    %79 = vector.extract_strided_slice %78 {offsets = [0, 0], sizes = [2, 32], strides = [1, 1]} : vector<2x128xf32> to vector<2x32xf32>
    %cst_25 = arith.constant 0.000000e+00 : f32
    %80 = vector.broadcast %cst_25 : f32 to vector<2x32xf32>
    %81 = arith.subf %80, %79 : vector<2x32xf32>
    %82 = math.exp %81 : vector<2x32xf32>
    %cst_26 = arith.constant 1.000000e+00 : f32
    %83 = vector.broadcast %cst_26 : f32 to vector<2x32xf32>
    %84 = arith.addf %83, %82 : vector<2x32xf32>
    %85 = tpu.reciprocal %84 {approx = true} : vector<2x32xf32> -> vector<2x32xf32>
    %86 = vector.extract_strided_slice %78 {offsets = [0, 32], sizes = [2, 32], strides = [1, 1]} : vector<2x128xf32> to vector<2x32xf32>
    %cst_27 = arith.constant 0.000000e+00 : f32
    %87 = vector.broadcast %cst_27 : f32 to vector<2x32xf32>
    %88 = arith.subf %87, %86 : vector<2x32xf32>
    %89 = math.exp %88 : vector<2x32xf32>
    %cst_28 = arith.constant 1.000000e+00 : f32
    %90 = vector.broadcast %cst_28 : f32 to vector<2x32xf32>
    %91 = arith.addf %90, %89 : vector<2x32xf32>
    %92 = tpu.reciprocal %91 {approx = true} : vector<2x32xf32> -> vector<2x32xf32>
    %93 = vector.extract_strided_slice %78 {offsets = [0, 64], sizes = [2, 32], strides = [1, 1]} : vector<2x128xf32> to vector<2x32xf32>
    %94 = math.tanh %93 : vector<2x32xf32>
    %95 = vector.extract_strided_slice %78 {offsets = [0, 96], sizes = [2, 32], strides = [1, 1]} : vector<2x128xf32> to vector<2x32xf32>
    %cst_29 = arith.constant 0.000000e+00 : f32
    %96 = vector.broadcast %cst_29 : f32 to vector<2x32xf32>
    %97 = arith.subf %96, %95 : vector<2x32xf32>
    %98 = math.exp %97 : vector<2x32xf32>
    %cst_30 = arith.constant 1.000000e+00 : f32
    %99 = vector.broadcast %cst_30 : f32 to vector<2x32xf32>
    %100 = arith.addf %99, %98 : vector<2x32xf32>
    %101 = tpu.reciprocal %100 {approx = true} : vector<2x32xf32> -> vector<2x32xf32>
    %102 = arith.mulf %92, %72 : vector<2x32xf32>
    %103 = arith.mulf %85, %94 : vector<2x32xf32>
    %104 = arith.addf %102, %103 : vector<2x32xf32>
    %105 = math.tanh %104 : vector<2x32xf32>
    %106 = arith.mulf %101, %105 : vector<2x32xf32>
    %107 = vector.extract_strided_slice %7 {offsets = [0, 3, 0], sizes = [2, 1, 128], strides = [1, 1, 1]} : vector<2x8x128xf32> to vector<2x1x128xf32>
    %108 = vector.shape_cast %107 : vector<2x1x128xf32> to vector<2x128xf32>
    %cst_31 = arith.constant dense<0.000000e+00> : vector<2x128xf32>
    %109 = tpu.matmul %106, %8, %cst_31 {dimension_numbers = #tpu.dot_dimension_numbers<[1], [0], [0], [1], [0, 0, 1, 1], [], []>} : vector<2x32xf32>, vector<32x128xf32>, vector<2x128xf32> -> vector<2x128xf32>
    %110 = arith.addf %108, %109 : vector<2x128xf32>
    %111 = vector.extract_strided_slice %110 {offsets = [0, 0], sizes = [2, 32], strides = [1, 1]} : vector<2x128xf32> to vector<2x32xf32>
    %cst_32 = arith.constant 0.000000e+00 : f32
    %112 = vector.broadcast %cst_32 : f32 to vector<2x32xf32>
    %113 = arith.subf %112, %111 : vector<2x32xf32>
    %114 = math.exp %113 : vector<2x32xf32>
    %cst_33 = arith.constant 1.000000e+00 : f32
    %115 = vector.broadcast %cst_33 : f32 to vector<2x32xf32>
    %116 = arith.addf %115, %114 : vector<2x32xf32>
    %117 = tpu.reciprocal %116 {approx = true} : vector<2x32xf32> -> vector<2x32xf32>
    %118 = vector.extract_strided_slice %110 {offsets = [0, 32], sizes = [2, 32], strides = [1, 1]} : vector<2x128xf32> to vector<2x32xf32>
    %cst_34 = arith.constant 0.000000e+00 : f32
    %119 = vector.broadcast %cst_34 : f32 to vector<2x32xf32>
    %120 = arith.subf %119, %118 : vector<2x32xf32>
    %121 = math.exp %120 : vector<2x32xf32>
    %cst_35 = arith.constant 1.000000e+00 : f32
    %122 = vector.broadcast %cst_35 : f32 to vector<2x32xf32>
    %123 = arith.addf %122, %121 : vector<2x32xf32>
    %124 = tpu.reciprocal %123 {approx = true} : vector<2x32xf32> -> vector<2x32xf32>
    %125 = vector.extract_strided_slice %110 {offsets = [0, 64], sizes = [2, 32], strides = [1, 1]} : vector<2x128xf32> to vector<2x32xf32>
    %126 = math.tanh %125 : vector<2x32xf32>
    %127 = vector.extract_strided_slice %110 {offsets = [0, 96], sizes = [2, 32], strides = [1, 1]} : vector<2x128xf32> to vector<2x32xf32>
    %cst_36 = arith.constant 0.000000e+00 : f32
    %128 = vector.broadcast %cst_36 : f32 to vector<2x32xf32>
    %129 = arith.subf %128, %127 : vector<2x32xf32>
    %130 = math.exp %129 : vector<2x32xf32>
    %cst_37 = arith.constant 1.000000e+00 : f32
    %131 = vector.broadcast %cst_37 : f32 to vector<2x32xf32>
    %132 = arith.addf %131, %130 : vector<2x32xf32>
    %133 = tpu.reciprocal %132 {approx = true} : vector<2x32xf32> -> vector<2x32xf32>
    %134 = arith.mulf %124, %104 : vector<2x32xf32>
    %135 = arith.mulf %117, %126 : vector<2x32xf32>
    %136 = arith.addf %134, %135 : vector<2x32xf32>
    %137 = math.tanh %136 : vector<2x32xf32>
    %138 = arith.mulf %133, %137 : vector<2x32xf32>
    %139 = vector.extract_strided_slice %7 {offsets = [0, 4, 0], sizes = [2, 1, 128], strides = [1, 1, 1]} : vector<2x8x128xf32> to vector<2x1x128xf32>
    %140 = vector.shape_cast %139 : vector<2x1x128xf32> to vector<2x128xf32>
    %cst_38 = arith.constant dense<0.000000e+00> : vector<2x128xf32>
    %141 = tpu.matmul %138, %8, %cst_38 {dimension_numbers = #tpu.dot_dimension_numbers<[1], [0], [0], [1], [0, 0, 1, 1], [], []>} : vector<2x32xf32>, vector<32x128xf32>, vector<2x128xf32> -> vector<2x128xf32>
    %142 = arith.addf %140, %141 : vector<2x128xf32>
    %143 = vector.extract_strided_slice %142 {offsets = [0, 0], sizes = [2, 32], strides = [1, 1]} : vector<2x128xf32> to vector<2x32xf32>
    %cst_39 = arith.constant 0.000000e+00 : f32
    %144 = vector.broadcast %cst_39 : f32 to vector<2x32xf32>
    %145 = arith.subf %144, %143 : vector<2x32xf32>
    %146 = math.exp %145 : vector<2x32xf32>
    %cst_40 = arith.constant 1.000000e+00 : f32
    %147 = vector.broadcast %cst_40 : f32 to vector<2x32xf32>
    %148 = arith.addf %147, %146 : vector<2x32xf32>
    %149 = tpu.reciprocal %148 {approx = true} : vector<2x32xf32> -> vector<2x32xf32>
    %150 = vector.extract_strided_slice %142 {offsets = [0, 32], sizes = [2, 32], strides = [1, 1]} : vector<2x128xf32> to vector<2x32xf32>
    %cst_41 = arith.constant 0.000000e+00 : f32
    %151 = vector.broadcast %cst_41 : f32 to vector<2x32xf32>
    %152 = arith.subf %151, %150 : vector<2x32xf32>
    %153 = math.exp %152 : vector<2x32xf32>
    %cst_42 = arith.constant 1.000000e+00 : f32
    %154 = vector.broadcast %cst_42 : f32 to vector<2x32xf32>
    %155 = arith.addf %154, %153 : vector<2x32xf32>
    %156 = tpu.reciprocal %155 {approx = true} : vector<2x32xf32> -> vector<2x32xf32>
    %157 = vector.extract_strided_slice %142 {offsets = [0, 64], sizes = [2, 32], strides = [1, 1]} : vector<2x128xf32> to vector<2x32xf32>
    %158 = math.tanh %157 : vector<2x32xf32>
    %159 = vector.extract_strided_slice %142 {offsets = [0, 96], sizes = [2, 32], strides = [1, 1]} : vector<2x128xf32> to vector<2x32xf32>
    %cst_43 = arith.constant 0.000000e+00 : f32
    %160 = vector.broadcast %cst_43 : f32 to vector<2x32xf32>
    %161 = arith.subf %160, %159 : vector<2x32xf32>
    %162 = math.exp %161 : vector<2x32xf32>
    %cst_44 = arith.constant 1.000000e+00 : f32
    %163 = vector.broadcast %cst_44 : f32 to vector<2x32xf32>
    %164 = arith.addf %163, %162 : vector<2x32xf32>
    %165 = tpu.reciprocal %164 {approx = true} : vector<2x32xf32> -> vector<2x32xf32>
    %166 = arith.mulf %156, %136 : vector<2x32xf32>
    %167 = arith.mulf %149, %158 : vector<2x32xf32>
    %168 = arith.addf %166, %167 : vector<2x32xf32>
    %169 = math.tanh %168 : vector<2x32xf32>
    %170 = arith.mulf %165, %169 : vector<2x32xf32>
    %171 = vector.extract_strided_slice %7 {offsets = [0, 5, 0], sizes = [2, 1, 128], strides = [1, 1, 1]} : vector<2x8x128xf32> to vector<2x1x128xf32>
    %172 = vector.shape_cast %171 : vector<2x1x128xf32> to vector<2x128xf32>
    %cst_45 = arith.constant dense<0.000000e+00> : vector<2x128xf32>
    %173 = tpu.matmul %170, %8, %cst_45 {dimension_numbers = #tpu.dot_dimension_numbers<[1], [0], [0], [1], [0, 0, 1, 1], [], []>} : vector<2x32xf32>, vector<32x128xf32>, vector<2x128xf32> -> vector<2x128xf32>
    %174 = arith.addf %172, %173 : vector<2x128xf32>
    %175 = vector.extract_strided_slice %174 {offsets = [0, 0], sizes = [2, 32], strides = [1, 1]} : vector<2x128xf32> to vector<2x32xf32>
    %cst_46 = arith.constant 0.000000e+00 : f32
    %176 = vector.broadcast %cst_46 : f32 to vector<2x32xf32>
    %177 = arith.subf %176, %175 : vector<2x32xf32>
    %178 = math.exp %177 : vector<2x32xf32>
    %cst_47 = arith.constant 1.000000e+00 : f32
    %179 = vector.broadcast %cst_47 : f32 to vector<2x32xf32>
    %180 = arith.addf %179, %178 : vector<2x32xf32>
    %181 = tpu.reciprocal %180 {approx = true} : vector<2x32xf32> -> vector<2x32xf32>
    %182 = vector.extract_strided_slice %174 {offsets = [0, 32], sizes = [2, 32], strides = [1, 1]} : vector<2x128xf32> to vector<2x32xf32>
    %cst_48 = arith.constant 0.000000e+00 : f32
    %183 = vector.broadcast %cst_48 : f32 to vector<2x32xf32>
    %184 = arith.subf %183, %182 : vector<2x32xf32>
    %185 = math.exp %184 : vector<2x32xf32>
    %cst_49 = arith.constant 1.000000e+00 : f32
    %186 = vector.broadcast %cst_49 : f32 to vector<2x32xf32>
    %187 = arith.addf %186, %185 : vector<2x32xf32>
    %188 = tpu.reciprocal %187 {approx = true} : vector<2x32xf32> -> vector<2x32xf32>
    %189 = vector.extract_strided_slice %174 {offsets = [0, 64], sizes = [2, 32], strides = [1, 1]} : vector<2x128xf32> to vector<2x32xf32>
    %190 = math.tanh %189 : vector<2x32xf32>
    %191 = vector.extract_strided_slice %174 {offsets = [0, 96], sizes = [2, 32], strides = [1, 1]} : vector<2x128xf32> to vector<2x32xf32>
    %cst_50 = arith.constant 0.000000e+00 : f32
    %192 = vector.broadcast %cst_50 : f32 to vector<2x32xf32>
    %193 = arith.subf %192, %191 : vector<2x32xf32>
    %194 = math.exp %193 : vector<2x32xf32>
    %cst_51 = arith.constant 1.000000e+00 : f32
    %195 = vector.broadcast %cst_51 : f32 to vector<2x32xf32>
    %196 = arith.addf %195, %194 : vector<2x32xf32>
    %197 = tpu.reciprocal %196 {approx = true} : vector<2x32xf32> -> vector<2x32xf32>
    %198 = arith.mulf %188, %168 : vector<2x32xf32>
    %199 = arith.mulf %181, %190 : vector<2x32xf32>
    %200 = arith.addf %198, %199 : vector<2x32xf32>
    %201 = math.tanh %200 : vector<2x32xf32>
    %202 = arith.mulf %197, %201 : vector<2x32xf32>
    %203 = vector.extract_strided_slice %7 {offsets = [0, 6, 0], sizes = [2, 1, 128], strides = [1, 1, 1]} : vector<2x8x128xf32> to vector<2x1x128xf32>
    %204 = vector.shape_cast %203 : vector<2x1x128xf32> to vector<2x128xf32>
    %cst_52 = arith.constant dense<0.000000e+00> : vector<2x128xf32>
    %205 = tpu.matmul %202, %8, %cst_52 {dimension_numbers = #tpu.dot_dimension_numbers<[1], [0], [0], [1], [0, 0, 1, 1], [], []>} : vector<2x32xf32>, vector<32x128xf32>, vector<2x128xf32> -> vector<2x128xf32>
    %206 = arith.addf %204, %205 : vector<2x128xf32>
    %207 = vector.extract_strided_slice %206 {offsets = [0, 0], sizes = [2, 32], strides = [1, 1]} : vector<2x128xf32> to vector<2x32xf32>
    %cst_53 = arith.constant 0.000000e+00 : f32
    %208 = vector.broadcast %cst_53 : f32 to vector<2x32xf32>
    %209 = arith.subf %208, %207 : vector<2x32xf32>
    %210 = math.exp %209 : vector<2x32xf32>
    %cst_54 = arith.constant 1.000000e+00 : f32
    %211 = vector.broadcast %cst_54 : f32 to vector<2x32xf32>
    %212 = arith.addf %211, %210 : vector<2x32xf32>
    %213 = tpu.reciprocal %212 {approx = true} : vector<2x32xf32> -> vector<2x32xf32>
    %214 = vector.extract_strided_slice %206 {offsets = [0, 32], sizes = [2, 32], strides = [1, 1]} : vector<2x128xf32> to vector<2x32xf32>
    %cst_55 = arith.constant 0.000000e+00 : f32
    %215 = vector.broadcast %cst_55 : f32 to vector<2x32xf32>
    %216 = arith.subf %215, %214 : vector<2x32xf32>
    %217 = math.exp %216 : vector<2x32xf32>
    %cst_56 = arith.constant 1.000000e+00 : f32
    %218 = vector.broadcast %cst_56 : f32 to vector<2x32xf32>
    %219 = arith.addf %218, %217 : vector<2x32xf32>
    %220 = tpu.reciprocal %219 {approx = true} : vector<2x32xf32> -> vector<2x32xf32>
    %221 = vector.extract_strided_slice %206 {offsets = [0, 64], sizes = [2, 32], strides = [1, 1]} : vector<2x128xf32> to vector<2x32xf32>
    %222 = math.tanh %221 : vector<2x32xf32>
    %223 = vector.extract_strided_slice %206 {offsets = [0, 96], sizes = [2, 32], strides = [1, 1]} : vector<2x128xf32> to vector<2x32xf32>
    %cst_57 = arith.constant 0.000000e+00 : f32
    %224 = vector.broadcast %cst_57 : f32 to vector<2x32xf32>
    %225 = arith.subf %224, %223 : vector<2x32xf32>
    %226 = math.exp %225 : vector<2x32xf32>
    %cst_58 = arith.constant 1.000000e+00 : f32
    %227 = vector.broadcast %cst_58 : f32 to vector<2x32xf32>
    %228 = arith.addf %227, %226 : vector<2x32xf32>
    %229 = tpu.reciprocal %228 {approx = true} : vector<2x32xf32> -> vector<2x32xf32>
    %230 = arith.mulf %220, %200 : vector<2x32xf32>
    %231 = arith.mulf %213, %222 : vector<2x32xf32>
    %232 = arith.addf %230, %231 : vector<2x32xf32>
    %233 = math.tanh %232 : vector<2x32xf32>
    %234 = arith.mulf %229, %233 : vector<2x32xf32>
    %235 = vector.extract_strided_slice %7 {offsets = [0, 7, 0], sizes = [2, 1, 128], strides = [1, 1, 1]} : vector<2x8x128xf32> to vector<2x1x128xf32>
    %236 = vector.shape_cast %235 : vector<2x1x128xf32> to vector<2x128xf32>
    %cst_59 = arith.constant dense<0.000000e+00> : vector<2x128xf32>
    %237 = tpu.matmul %234, %8, %cst_59 {dimension_numbers = #tpu.dot_dimension_numbers<[1], [0], [0], [1], [0, 0, 1, 1], [], []>} : vector<2x32xf32>, vector<32x128xf32>, vector<2x128xf32> -> vector<2x128xf32>
    %238 = arith.addf %236, %237 : vector<2x128xf32>
    %239 = vector.extract_strided_slice %238 {offsets = [0, 0], sizes = [2, 32], strides = [1, 1]} : vector<2x128xf32> to vector<2x32xf32>
    %cst_60 = arith.constant 0.000000e+00 : f32
    %240 = vector.broadcast %cst_60 : f32 to vector<2x32xf32>
    %241 = arith.subf %240, %239 : vector<2x32xf32>
    %242 = math.exp %241 : vector<2x32xf32>
    %cst_61 = arith.constant 1.000000e+00 : f32
    %243 = vector.broadcast %cst_61 : f32 to vector<2x32xf32>
    %244 = arith.addf %243, %242 : vector<2x32xf32>
    %245 = tpu.reciprocal %244 {approx = true} : vector<2x32xf32> -> vector<2x32xf32>
    %246 = vector.extract_strided_slice %238 {offsets = [0, 32], sizes = [2, 32], strides = [1, 1]} : vector<2x128xf32> to vector<2x32xf32>
    %cst_62 = arith.constant 0.000000e+00 : f32
    %247 = vector.broadcast %cst_62 : f32 to vector<2x32xf32>
    %248 = arith.subf %247, %246 : vector<2x32xf32>
    %249 = math.exp %248 : vector<2x32xf32>
    %cst_63 = arith.constant 1.000000e+00 : f32
    %250 = vector.broadcast %cst_63 : f32 to vector<2x32xf32>
    %251 = arith.addf %250, %249 : vector<2x32xf32>
    %252 = tpu.reciprocal %251 {approx = true} : vector<2x32xf32> -> vector<2x32xf32>
    %253 = vector.extract_strided_slice %238 {offsets = [0, 64], sizes = [2, 32], strides = [1, 1]} : vector<2x128xf32> to vector<2x32xf32>
    %254 = math.tanh %253 : vector<2x32xf32>
    %255 = vector.extract_strided_slice %238 {offsets = [0, 96], sizes = [2, 32], strides = [1, 1]} : vector<2x128xf32> to vector<2x32xf32>
    %cst_64 = arith.constant 0.000000e+00 : f32
    %256 = vector.broadcast %cst_64 : f32 to vector<2x32xf32>
    %257 = arith.subf %256, %255 : vector<2x32xf32>
    %258 = math.exp %257 : vector<2x32xf32>
    %cst_65 = arith.constant 1.000000e+00 : f32
    %259 = vector.broadcast %cst_65 : f32 to vector<2x32xf32>
    %260 = arith.addf %259, %258 : vector<2x32xf32>
    %261 = tpu.reciprocal %260 {approx = true} : vector<2x32xf32> -> vector<2x32xf32>
    %262 = arith.mulf %252, %232 : vector<2x32xf32>
    %263 = arith.mulf %245, %254 : vector<2x32xf32>
    %264 = arith.addf %262, %263 : vector<2x32xf32>
    %265 = math.tanh %264 : vector<2x32xf32>
    %266 = arith.mulf %261, %265 : vector<2x32xf32>
    %267 = vector.shape_cast %42 : vector<2x32xf32> to vector<2x1x32xf32>
    %268 = vector.shape_cast %74 : vector<2x32xf32> to vector<2x1x32xf32>
    %269 = vector.shape_cast %106 : vector<2x32xf32> to vector<2x1x32xf32>
    %270 = vector.shape_cast %138 : vector<2x32xf32> to vector<2x1x32xf32>
    %271 = vector.shape_cast %170 : vector<2x32xf32> to vector<2x1x32xf32>
    %272 = vector.shape_cast %202 : vector<2x32xf32> to vector<2x1x32xf32>
    %273 = vector.shape_cast %234 : vector<2x32xf32> to vector<2x1x32xf32>
    %274 = vector.shape_cast %266 : vector<2x32xf32> to vector<2x1x32xf32>
    %275 = tpu.concatenate %267, %268, %269, %270, %271, %272, %273, %274 in 1 : vector<2x1x32xf32>, vector<2x1x32xf32>, vector<2x1x32xf32>, vector<2x1x32xf32>, vector<2x1x32xf32>, vector<2x1x32xf32>, vector<2x1x32xf32>, vector<2x1x32xf32> -> vector<2x8x32xf32>
    %276 = vector.shape_cast %275 : vector<2x8x32xf32> to vector<16x32xf32>
    %c0_66 = arith.constant 0 : index
    %c0_67 = arith.constant 0 : index
    %277 = vector.load %arg5[%c0_66, %c0_67] : memref<32x128xf32, #tpu.memory_space<vmem>>, vector<32x128xf32>
    %cst_68 = arith.constant dense<0.000000e+00> : vector<16x128xf32>
    %278 = tpu.matmul %276, %277, %cst_68 {dimension_numbers = #tpu.dot_dimension_numbers<[1], [0], [0], [1], [0, 0, 1, 1], [], []>} : vector<16x32xf32>, vector<32x128xf32>, vector<16x128xf32> -> vector<16x128xf32>
    %c0_69 = arith.constant 0 : index
    %c0_70 = arith.constant 0 : index
    %279 = vector.load %arg6[%c0_69, %c0_70] : memref<1x128xf32, #tpu.memory_space<vmem>>, vector<1x128xf32>
    %280 = vector.broadcast %279 : vector<1x128xf32> to vector<16x128xf32>
    %281 = arith.addf %278, %280 : vector<16x128xf32>
    %282 = vector.shape_cast %281 : vector<16x128xf32> to vector<2x8x128xf32>
    %c0_71 = arith.constant 0 : index
    %c0_72 = arith.constant 0 : index
    %c0_73 = arith.constant 0 : index
    %283 = vector.load %arg7[%c0_71, %c0_72, %c0_73] : memref<2x8x128xf32, #tpu.memory_space<vmem>>, vector<2x8x128xf32>
    tpu.vector_store %arg7[%c0_71, %c0_72, %c0_73], %282 {strides = array<i32>} : memref<2x8x128xf32, #tpu.memory_space<vmem>>, vector<2x8x128xf32>,
    return
  }
  func.func @transform_0(%arg0: i32) -> (i32, i32, i32) {
    %c0_i32 = arith.constant 0 : i32
    %c0_i32_0 = arith.constant 0 : i32
    %c0_i32_1 = arith.constant 0 : i32
    return %arg0, %c0_i32, %c0_i32_0 : i32, i32, i32
  }
  func.func @transform_1(%arg0: i32) -> (i32, i32) {
    %c0_i32 = arith.constant 0 : i32
    %c0_i32_0 = arith.constant 0 : i32
    %c0_i32_1 = arith.constant 0 : i32
    return %c0_i32, %c0_i32_0 : i32, i32
  }
  func.func @transform_2(%arg0: i32) -> (i32, i32) {
    %c0_i32 = arith.constant 0 : i32
    %c0_i32_0 = arith.constant 0 : i32
    %c0_i32_1 = arith.constant 0 : i32
    return %c0_i32, %c0_i32_0 : i32, i32
  }
  func.func @transform_3(%arg0: i32) -> (i32, i32) {
    %c0_i32 = arith.constant 0 : i32
    %c0_i32_0 = arith.constant 0 : i32
    %c0_i32_1 = arith.constant 0 : i32
    return %c0_i32, %c0_i32_0 : i32, i32
  }
  func.func @transform_4(%arg0: i32) -> (i32, i32) {
    %c0_i32 = arith.constant 0 : i32
    %c0_i32_0 = arith.constant 0 : i32
    %c0_i32_1 = arith.constant 0 : i32
    return %c0_i32, %c0_i32_0 : i32, i32
  }
  func.func @transform_5(%arg0: i32) -> (i32, i32) {
    %c0_i32 = arith.constant 0 : i32
    %c0_i32_0 = arith.constant 0 : i32
    %c0_i32_1 = arith.constant 0 : i32
    return %c0_i32, %c0_i32_0 : i32, i32
  }
  func.func @transform_6(%arg0: i32) -> (i32, i32, i32) {
    %c0_i32 = arith.constant 0 : i32
    %c0_i32_0 = arith.constant 0 : i32
    %c0_i32_1 = arith.constant 0 : i32
    return %arg0, %c0_i32, %c0_i32_0 : i32, i32, i32
  }
}

</mosaic_0001>

<bundles_post_ra>
// kernel: tpu_custom_call.1
= control target key start
LH: loop header
LB: loop body
LE: loop exit
PB: predicated region body
PF: predicated region fallthrough
CT: control target
= control target key end

     0   :  { %11 = vsyncpa [#allocation3], 0  ;;  %s2186_s0 = inlined_call_operand.hbm [shape: f32[2,8,64], index: 0, kind: input, shape index: {}]   ;;  %s2187_s1 = inlined_call_operand.hbm [shape: f32[64,128], index: 1, kind: input, shape index: {}]   ;;  %s2188_s2 = inlined_call_operand.hbm [shape: f32[32,128], index: 2, kind: input, shape index: {}]   ;;  %s2189_s3 = inlined_call_operand.vmem [shape: f32[1,128], index: 3, kind: input, shape index: {}]   ;;  %s2190_s4 = inlined_call_operand.hbm [shape: f32[32,128], index: 4, kind: input, shape index: {}]   ;;  %s2191_s5 = inlined_call_operand.vmem [shape: f32[1,128], index: 5, kind: input, shape index: {}]   ;;  %s2192_s6 = inlined_call_operand.hbm [shape: f32[2,8,128], index: 6, kind: output, shape index: {}]  }
   0x1   :  { %12 = vsyncpa [#allocation6], 0 }
   0x2   :  { %13 = vsyncpa [#allocation9], 0 }
   0x3   :  { %14 = vsyncpa [#allocation4], 0  ;;  %s1844_s21 = smov [#allocation5]   ;;  %s1845_s23 = smov [#allocation2]  }
   0x4   :  { %s32_s22 = sshll.u32 %s1844_s21, 4  ;;  %s20_s24 = sshll.u32 %s1845_s23, 4  ;;  %s33_s22 = int_to_ptr.vmem [resolvable:$true] %s32_s22  ;;  %s21_s24 = int_to_ptr.vmem [resolvable:$true] %s20_s24 }
   0x5   :  { %s1744_s25 = scalar_lea.vmem %s33_s22, 1024  ;;  %p1749_p1 = scmp.lt.s32.totalorder %s33_s22, %s33_s22 }
   0x6   :  { %p1745_p0 = scmp.ne.s32.totalorder %s33_s22, %s1744_s25  ;;  %p1750_p2 = scmp.lt.s32.totalorder %s1744_s25, %s1744_s25 }
   0x8   :  { %p1751_p3 = por %p1750_p2, %p1749_p1 }
   0xa   :  { %p1752_p4 = pnand %p1751_p3, %p1745_p0 }
   0xc   :  { %1755 = shalt.err (!%p1752_p4)
}
   0xd   :  { %s1846_s26 = smov 128   ;;  %s1847_s27 = smov 8  }
   0xe   :  { %38 = dma.hbm_to_vmem [thread:$0]  %s2187_s1, 1024, %s33_s22, [#allocation6], %s1846_s26, %s1846_s26, %s1847_s27  }
   0xf   :  { %s1764_s30 = scalar_lea.vmem %s21_s24, 256  ;;  %p1769_p6 = scmp.lt.s32.totalorder %s21_s24, %s21_s24 }
  0x10   :  { %p1765_p5 = scmp.ne.s32.totalorder %s21_s24, %s1764_s30  ;;  %p1770_p7 = scmp.lt.s32.totalorder %s1764_s30, %s1764_s30 }
  0x12   :  { %p1771_p8 = por %p1770_p7, %p1769_p6 }
  0x14   :  { %p1772_p9 = pnand %p1771_p8, %p1765_p5 }
  0x16   :  { %1775 = shalt.err (!%p1772_p9)
}
  0x17   :  { %26 = dma.hbm_to_vmem [thread:$0]  %s2186_s0, 256, %s21_s24, [#allocation3], %s1846_s26, %s1846_s26, %s1847_s27  }
  0x18   :  { %s1848_s9 = smov [#allocation7]   ;;  %s1849_s11 = smov [#allocation8]  }
  0x19   :  { %s44_s10 = sshll.u32 %s1848_s9, 4  ;;  %s58_s12 = sshll.u32 %s1849_s11, 4  ;;  %s45_s10 = int_to_ptr.vmem [resolvable:$true] %s44_s10  ;;  %s59_s12 = int_to_ptr.vmem [resolvable:$true] %s58_s12 }
  0x1a   :  { %s1784_s1 = scalar_lea.vmem %s45_s10, 512  ;;  %p1789_p11 = scmp.lt.s32.totalorder %s45_s10, %s45_s10 }
  0x1b   :  { %p1785_p10 = scmp.ne.s32.totalorder %s45_s10, %s1784_s1  ;;  %p1790_p12 = scmp.lt.s32.totalorder %s1784_s1, %s1784_s1 }
  0x1d   :  { %p1791_p13 = por %p1790_p12, %p1789_p11 }
  0x1f   :  { %p1792_p0 = pnand %p1791_p13, %p1785_p10 }
  0x21   :  { %1795 = shalt.err (!%p1792_p0)
}
  0x22   :  { %50 = dma.hbm_to_vmem [thread:$0]  %s2188_s2, 512, %s45_s10, [#allocation6], %s1846_s26, %s1846_s26, %s1847_s27  }
  0x23   :  { %s1804_s0 = scalar_lea.vmem %s59_s12, 512  ;;  %p1809_p2 = scmp.lt.s32.totalorder %s59_s12, %s59_s12 }
  0x24   :  { %p1805_p1 = scmp.ne.s32.totalorder %s59_s12, %s1804_s0  ;;  %p1810_p3 = scmp.lt.s32.totalorder %s1804_s0, %s1804_s0 }
  0x26   :  { %p1811_p4 = por %p1810_p3, %p1809_p2 }
  0x28   :  { %p1812_p5 = pnand %p1811_p4, %p1805_p1 }
  0x2a   :  { %1815 = shalt.err (!%p1812_p5)
}
  0x2b   :  { %64 = dma.hbm_to_vmem [thread:$0]  %s2190_s4, 512, %s59_s12, [#allocation9], %s1846_s26, %s1846_s26, %s1847_s27  }
  0x2c   :  { %1836 = dma.done.wait [#allocation3], 256  }
  0x2d   :  { %1837 = vsyncadd [#allocation3], 4294967040 }
  0x2e   :  { %1838 = dma.done.wait [#allocation6], 1536  }
  0x2f   :  { %1839 = vsyncadd [#allocation6], 4294965760 }
  0x30   :  { %1840 = dma.done.wait [#allocation9], 512  }
  0x31   :  { %1841 = vsyncadd [#allocation9], 4294966784  ;;  %v1850_v0 = vmov 0.0   ;;  %vm1851_vm0 = vmmov 0   ;;  %v88_v1 = vld [vmem:[#allocation5 + $0x38] sm:$0xff]  ;;  %v87_v2 = vld [vmem:[#allocation5 + $0x30] sm:$0xff] }
  0x32   :  { %1498 = vmatprep.subr.mxu1 %v1850_v0  ;;  %1506 = vmatprep.mubr.msk.f32.mxu1 %vm1851_vm0, %v1850_v0  ;;  %v1917_v3 = vld [vmem:[#allocation7 + $0x18] sm:$0xff]  ;;  %v86_v4 = vld [vmem:[#allocation5 + $0x28] sm:$0xff]  ;;  %v1920_v5 = vld [vmem:[#allocation7 + $0x10] sm:$0xff]  ;;  %vm96_vm1 = vcmask 523264   ;;  %s1852_s17 = smov 64   ;;  %vm311_vm2 = vcmask 1041409  }
  0x33   :  { %1479 = vmatprep.subr.mxu0 %v88_v1  ;;  %1499 = vmatpush3.msra.mxu1 %v1917_v3  ;;  %v1923_v6 = vld [vmem:[#allocation7 + $0x8] sm:$0xff]  ;;  %v85_v7 = vld [vmem:[#allocation5 + $0x20] sm:$0xff]  ;;  %v84_v9 = vld [vmem:[#allocation5 + $0x18] sm:$0xff]  ;;  %vm182_vm3 = vcmask 261120   ;;  %vm1272_vm4 = vcmask 1040384   ;;  %vm1275_vm5 = vcmask 1041408  }
  0x34   :  { %1480 = vmatpush3.msra.mxu0 %v88_v1  ;;  %1500 = vmatprep.subr.mxu1 %v1850_v0  ;;  %v1927_v8 = vld [vmem:[#allocation7] sm:$0xff]  ;;  %v79_v10 = vld [vmem:[#allocation2] sm:$0xff]  ;;  %v82_v12 = vld [vmem:[#allocation5 + $0x8] sm:$0xff]  ;;  %vm1278_vm6 = vcmask 1042432   ;;  %vm1281_vm7 = vcmask 1043456   ;;  %vm1284_vm8 = vcmask 1044480  }
  0x35   :  { %1481 = vmatprep.subr.mxu0 %v87_v2  ;;  %1501 = vmatpush3.msra.mxu1 %v1920_v5  ;;  %v83_v11 = vld [vmem:[#allocation5 + $0x10] sm:$0xff]  ;;  %v81_v13 = vld [vmem:[#allocation5] sm:$0xff]  ;;  %v80_v14 = vld [vmem:[#allocation2 + $0x8] sm:$0xff]  ;;  %vm1287_vm9 = vcmask 1045504   ;;  %vm1290_vm10 = vcmask 1046528   ;;  %s1854_s20 = smov [#allocation10]  }
  0x36   :  { %1482 = vmatpush3.msra.mxu0 %v87_v2  ;;  %1502 = vmatprep.subr.mxu1 %v1850_v0  ;;  %v1410_v17 = vld [vmem:[%s2189_s3] ss:$0 sm:$0xff]  ;;  %s1853_s3 = smov 32   ;;  %s1396_s21 = sshll.u32 %s1854_s20, 4  ;;  %s1397_s21 = int_to_ptr.vmem [resolvable:$true] %s1396_s21 }
  0x37   :  { %1483 = vmatprep.subr.mxu0 %v86_v4  ;;  %1503 = vmatpush3.msra.mxu1 %v1923_v6  ;;  %s1816_s22 = scalar_lea.vmem %s1397_s21, 256  ;;  %p1821_p7 = scmp.lt.s32.totalorder %s1397_s21, %s1397_s21 }
  0x38   :  { %1484 = vmatpush3.msra.mxu0 %v86_v4  ;;  %1504 = vmatprep.subr.mxu1 %v1850_v0  ;;  %p1817_p6 = scmp.ne.s32.totalorder %s1397_s21, %s1816_s22  ;;  %p1822_p8 = scmp.lt.s32.totalorder %s1816_s22, %s1816_s22 }
  0x39   :  { %1485 = vmatprep.subr.mxu0 %v85_v7  ;;  %1505 = vmatpush3.msra.mxu1 %v1927_v8 }
  0x3a   :  { %1486 = vmatpush3.msra.mxu0 %v85_v7  ;;  %1507 = vmatmul.mubr.f32.vlgmr.msra.gmra.mxu1 %v1850_v0  ;;  %p1823_p9 = por %p1822_p8, %p1821_p7 }
  0x3b   :  { %1487 = vmatprep.subr.mxu0 %v84_v9  ;;  %1495 = vmatprep.mubr.msk.f32.mxu0 %vm96_vm1, %v79_v10 }
  0x3c   :  { %1488 = vmatpush3.msra.mxu0 %v84_v9  ;;  %1509 = vmatprep.subr.mxu1 %v1850_v0  ;;  %p1824_p10 = pnand %p1823_p9, %p1817_p6 }
  0x3d   :  { %1489 = vmatprep.subr.mxu0 %v83_v11  ;;  %1510 = vmatpush3.msra.mxu1 %v1917_v3 }
  0x3e   :  { %1490 = vmatpush3.msra.mxu0 %v83_v11  ;;  %1511 = vmatprep.subr.mxu1 %v1850_v0 }
  0x3f   :  { %1491 = vmatprep.subr.mxu0 %v82_v12  ;;  %1512 = vmatpush3.msra.mxu1 %v1920_v5 }
  0x40   :  { %1492 = vmatpush3.msra.mxu0 %v82_v12  ;;  %1513 = vmatprep.subr.mxu1 %v1850_v0 }
  0x41   :  { %1493 = vmatprep.subr.mxu0 %v81_v13  ;;  %1514 = vmatpush3.msra.mxu1 %v1923_v6 }
  0x42   :  { %1494 = vmatpush3.msra.mxu0 %v81_v13  ;;  %1515 = vmatprep.subr.mxu1 %v1850_v0 }
  0x43   :  { %1496 = vmatmul.mubr.msk.f32.vlgmr.msra.gmra.mxu0 %vm96_vm1, %v80_v14  ;;  %1516 = vmatpush3.msra.mxu1 %v1927_v8 }
  0x44   :  { %1517 = vmatprep.mubr.msk.f32.mxu1 %vm1851_vm0, %v1850_v0  ;;  %1520 = vmatprep.subr.mxu0 %v1850_v0 }
  0x45   :  { %1528 = vmatprep.mubr.msk.f32.mxu0 %vm1851_vm0, %v1850_v0  ;;  %1521 = vmatpush3.msra.mxu0 %v1917_v3 }
  0x46   :  { %1531 = vmatprep.subr.mxu1 %v1850_v0  ;;  %1522 = vmatprep.subr.mxu0 %v1850_v0 }
  0x47   :  { %1523 = vmatpush3.msra.mxu0 %v1920_v5 }
  0x48   :  { %1524 = vmatprep.subr.mxu0 %v1850_v0 }
  0x49   :  { %1525 = vmatpush3.msra.mxu0 %v1923_v6 }
  0x4a   :  { %1526 = vmatprep.subr.mxu0 %v1850_v0 }
  0x4b   :  { %1527 = vmatpush3.msra.mxu0 %v1927_v8 }
  0x4c   :  { %1542 = vmatprep.subr.mxu0 %v1850_v0 }
  0xfa   :  { %v252_v15 = vpop.f32.mrf.mxu1 }
  0xfb   :  { %v257_v18 = vrot.slane %v252_v15, 1 }
  0xfc   :  { %v1508_v16 = vpop.f32.mrf.mxu1 }
 0x103   :  { %v1497_v19 = vpop.f32.mrf.mxu0 }
 0x104   :  { %v1960_v20 = vadd.f32 %v1497_v19, %v1410_v17 }
 0x105   :  { %v169_v21 = vpop.f32.mrf.mxu0 }
 0x106   :  { %v1962_v22 = vadd.f32 %v1410_v17, %v169_v21  ;;  %v261_v23 = vadd.f32 %v257_v18, %v1960_v20 }
 0x108   :  { %v260_v24 = vadd.f32 %v252_v15, %v1962_v22  ;;  %1608 = vtanh.f32 %v261_v23  ;;  %v263_v27 = vsub.f32 0.0, %v261_v23 }
 0x10a   :  { %1610 = vtanh.f32 %v260_v24  ;;  %v262_v28 = vsub.f32 0.0, %v260_v24  ;;  %v266_v29 = vmul.f32 1.442695, %v263_v27 }
 0x10c   :  { %v264_v30 = vmul.f32 1.442695, %v262_v28  ;;  %1612 = vpow2.f32 %v266_v29 }
 0x10e   :  { %1614 = vpow2.f32 %v264_v30 }
 0x115   :  { %v1609_v25 = vpop.eup %1608 }
 0x116   :  { %280 = vrot.lane.b32.xlu0 %v1609_v25, %s1852_s17 }
 0x117   :  { %v1611_v26 = vpop.eup %1610 }
 0x119   :  { %v1613_v31 = vpop.eup %1612 }
 0x11a   :  { %278 = vrot.lane.b32.xlu0 %v1611_v26, %s1852_s17  ;;  %v269_v32 = vadd.f32 1.0, %v1613_v31 }
 0x11b   :  { %v1615_v33 = vpop.eup %1614 }
 0x11c   :  { %1616 = vrcp.f32 %v269_v32  ;;  %v268_v34 = vadd.f32 1.0, %v1615_v33 }
 0x11e   :  { %1618 = vrcp.f32 %v268_v34 }
 0x129   :  { %v1617_v35 = vpop.eup %1616 }
 0x12a   :  { %v275_v41 = vmul.f32 0.0, %v1617_v35 }
 0x12b   :  { %v1619_v38 = vpop.eup %1618 }
 0x12c   :  { %v274_v44 = vmul.f32 0.0, %v1619_v38 }
 0x188   :  { %v281_v36 = vpop.permute.xlu0 %280 }
 0x189   :  { %v285_v37 = vmul.f32 %v1617_v35, %v281_v36 }
 0x18b   :  { %290 = vrot.lane.b32.xlu1 %v285_v37, %s1853_s3 }
 0x18c   :  { %v279_v39 = vpop.permute.xlu0 %278 }
 0x18d   :  { %v284_v40 = vmul.f32 %v1619_v38, %v279_v39 }
 0x18f   :  { %288 = vrot.lane.b32.xlu1 %v284_v40, %s1853_s3 }
 0x1fd   :  { %v291_v42 = vpop.permute.xlu1 %290 }
 0x1fe   :  { %v1970_v43 = vadd.f32 %v291_v42, %v275_v41 }
 0x200   :  { %1620 = vtanh.f32 %v1970_v43  ;;  %v408_v18 = vrot.slane %v1970_v43, 7 }
 0x201   :  { %v289_v45 = vpop.permute.xlu1 %288 }
 0x202   :  { %v1973_v46 = vadd.f32 %v289_v45, %v274_v44 }
 0x204   :  { %1622 = vtanh.f32 %v1973_v46  ;;  %v407_v19 = vrot.slane %v1973_v46, 7 }
 0x20d   :  { %v1621_v47 = vpop.eup %1620 }
 0x20e   :  { %302 = vrot.lane.b32.xlu0 %v1621_v47, %s1852_s17 }
 0x211   :  { %v1623_v48 = vpop.eup %1622 }
 0x212   :  { %300 = vrot.lane.b32.xlu1 %v1623_v48, %s1852_s17 }
 0x280   :  { %v303_v49 = vpop.permute.xlu0 %302 }
 0x281   :  { %v1978_v50 = vmul.f32 %v1617_v35, %v303_v49 }
 0x283   :  { %v310_v52 = vrot.slane %v1978_v50, 7 }
 0x284   :  { %v301_v51 = vpop.permute.xlu1 %300 }
 0x285   :  { %v1981_v53 = vmul.f32 %v1619_v38, %v301_v51 }
 0x287   :  { %v312_v54 = vsel %vm311_vm2, %v310_v52, %v1981_v53 }
 0x288   :  { %313 = vrot.lane.b32.xlu0 %v312_v54, %s1853_s3 }
 0x2fa   :  { %v314_v55 = vpop.permute.xlu0 %313 }
 0x2fb   :  { %1518 = vmatmul.mubr.msk.f32.vlgmr.msra.gmra.mxu1 %vm182_vm3, %v314_v55 }
 0x2fc   :  { %1532 = vmatpush3.msra.mxu1 %v1917_v3  ;;  %1539 = vmatprep.mubr.msk.f32.mxu1 %vm1851_vm0, %v1850_v0 }
 0x2fd   :  { %1533 = vmatprep.subr.mxu1 %v1850_v0 }
 0x2fe   :  { %1534 = vmatpush3.msra.mxu1 %v1920_v5 }
 0x2ff   :  { %1535 = vmatprep.subr.mxu1 %v1850_v0 }
 0x300   :  { %1536 = vmatpush3.msra.mxu1 %v1923_v6 }
 0x301   :  { %1537 = vmatprep.subr.mxu1 %v1850_v0 }
 0x302   :  { %1538 = vmatpush3.msra.mxu1 %v1927_v8 }
 0x303   :  { %1553 = vmatprep.subr.mxu1 %v1850_v0 }
 0x3bb   :  { %v383_v56 = vpop.f32.mrf.mxu1 }
 0x3bc   :  { %v388_v57 = vrot.slane %v383_v56, 7  ;;  %v392_v58 = vadd.f32 %v383_v56, %v1960_v20 }
 0x3bd   :  { %v1519_v59 = vpop.f32.mrf.mxu1 }
 0x3be   :  { %v391_v60 = vadd.f32 %v388_v57, %v1962_v22  ;;  %1624 = vtanh.f32 %v392_v58  ;;  %v394_v63 = vsub.f32 0.0, %v392_v58 }
 0x3c0   :  { %1626 = vtanh.f32 %v391_v60  ;;  %v393_v1 = vsub.f32 0.0, %v391_v60  ;;  %v397_v2 = vmul.f32 1.442695, %v394_v63 }
 0x3c2   :  { %v395_v4 = vmul.f32 1.442695, %v393_v1  ;;  %1628 = vpow2.f32 %v397_v2 }
 0x3c4   :  { %1630 = vpow2.f32 %v395_v4 }
 0x3cb   :  { %v1625_v61 = vpop.eup %1624 }
 0x3cc   :  { %417 = vrot.lane.b32.xlu0 %v1625_v61, %s1852_s17 }
 0x3cd   :  { %v1627_v62 = vpop.eup %1626 }
 0x3ce   :  { %415 = vrot.lane.b32.xlu1 %v1627_v62, %s1852_s17 }
 0x3cf   :  { %v1629_v7 = vpop.eup %1628 }
 0x3d0   :  { %v400_v10 = vadd.f32 1.0, %v1629_v7 }
 0x3d1   :  { %v1631_v9 = vpop.eup %1630 }
 0x3d2   :  { %v399_v11 = vadd.f32 1.0, %v1631_v9  ;;  %1632 = vrcp.f32 %v400_v10 }
 0x3d4   :  { %1634 = vrcp.f32 %v399_v11 }
 0x3df   :  { %v1633_v12 = vpop.eup %1632 }
 0x3e0   :  { %v412_v21 = vmul.f32 %v1633_v12, %v408_v18 }
 0x3e1   :  { %v1635_v15 = vpop.eup %1634 }
 0x3e2   :  { %v411_v25 = vmul.f32 %v1635_v15, %v407_v19 }
 0x43e   :  { %v418_v13 = vpop.permute.xlu0 %417 }
 0x43f   :  { %v422_v14 = vmul.f32 %v1633_v12, %v418_v13 }
 0x440   :  { %v416_v16 = vpop.permute.xlu1 %415 }
 0x441   :  { %v421_v17 = vmul.f32 %v1635_v15, %v416_v16  ;;  %427 = vrot.lane.b32.xlu0 %v422_v14, %s1853_s3 }
 0x443   :  { %425 = vrot.lane.b32.xlu1 %v421_v17, %s1853_s3 }
 0x4b3   :  { %v428_v23 = vpop.permute.xlu0 %427 }
 0x4b4   :  { %v2005_v24 = vadd.f32 %v428_v23, %v412_v21 }
 0x4b5   :  { %v426_v26 = vpop.permute.xlu1 %425 }
 0x4b6   :  { %1636 = vtanh.f32 %v2005_v24  ;;  %v431_v27 = vadd.f32 %v426_v26, %v411_v25  ;;  %v545_v62 = vrot.slane %v2005_v24, 7 }
 0x4b8   :  { %1638 = vtanh.f32 %v431_v27  ;;  %v544_v61 = vrot.slane %v431_v27, 7 }
 0x4c3   :  { %v1637_v28 = vpop.eup %1636 }
 0x4c4   :  { %439 = vrot.lane.b32.xlu0 %v1637_v28, %s1852_s17 }
 0x4c5   :  { %v1639_v29 = vpop.eup %1638 }
 0x4c6   :  { %437 = vrot.lane.b32.xlu1 %v1639_v29, %s1852_s17 }
 0x536   :  { %v440_v30 = vpop.permute.xlu0 %439 }
 0x537   :  { %v2012_v33 = vmul.f32 %v1633_v12, %v440_v30 }
 0x538   :  { %v438_v31 = vpop.permute.xlu1 %437 }
 0x539   :  { %v2010_v32 = vmul.f32 %v1635_v15, %v438_v31  ;;  %v1274_v17 = vsel %vm1272_vm4, %v1978_v50, %v2012_v33 }
 0x53b   :  { %v447_v34 = vrot.slane %v2010_v32, 1  ;;  %v1273_v15 = vsel %vm1272_vm4, %v1981_v53, %v2010_v32 }
 0x53d   :  { %v448_v35 = vsel %vm311_vm2, %v2012_v33, %v447_v34 }
 0x53e   :  { %449 = vrot.lane.b32.xlu1 %v448_v35, %s1853_s3 }
 0x5b0   :  { %v450_v36 = vpop.permute.xlu1 %449 }
 0x5b1   :  { %1529 = vmatmul.mubr.msk.f32.vlgmr.msra.gmra.mxu0 %vm182_vm3, %v450_v36 }
 0x5b2   :  { %1543 = vmatpush3.msra.mxu0 %v1917_v3  ;;  %1550 = vmatprep.mubr.msk.f32.mxu0 %vm1851_vm0, %v1850_v0 }
 0x5b3   :  { %1544 = vmatprep.subr.mxu0 %v1850_v0 }
 0x5b4   :  { %1545 = vmatpush3.msra.mxu0 %v1920_v5 }
 0x5b5   :  { %1546 = vmatprep.subr.mxu0 %v1850_v0 }
 0x5b6   :  { %1547 = vmatpush3.msra.mxu0 %v1923_v6 }
 0x5b7   :  { %1548 = vmatprep.subr.mxu0 %v1850_v0 }
 0x5b8   :  { %1549 = vmatpush3.msra.mxu0 %v1927_v8 }
 0x5b9   :  { %1564 = vmatprep.subr.mxu0 %v1850_v0 }
 0x671   :  { %v519_v37 = vpop.f32.mrf.mxu0 }
 0x672   :  { %v524_v38 = vrot.slane %v519_v37, 6  ;;  %v525_v39 = vrot.slane %v519_v37, 7 }
 0x673   :  { %v1530_v40 = vpop.f32.mrf.mxu0 }
 0x674   :  { %v528_v41 = vadd.f32 %v524_v38, %v1962_v22  ;;  %v529_v42 = vadd.f32 %v525_v39, %v1960_v20 }
 0x676   :  { %1640 = vtanh.f32 %v528_v41  ;;  %v530_v45 = vsub.f32 0.0, %v528_v41  ;;  %v531_v46 = vsub.f32 0.0, %v529_v42 }
 0x677   :  { %1642 = vtanh.f32 %v529_v42 }
 0x678   :  { %v532_v47 = vmul.f32 1.442695, %v530_v45  ;;  %v534_v48 = vmul.f32 1.442695, %v531_v46 }
 0x67a   :  { %1644 = vpow2.f32 %v532_v47 }
 0x67b   :  { %1646 = vpow2.f32 %v534_v48 }
 0x683   :  { %v1641_v43 = vpop.eup %1640 }
 0x684   :  { %v1643_v44 = vpop.eup %1642  ;;  %552 = vrot.lane.b32.xlu0 %v1641_v43, %s1852_s17 }
 0x685   :  { %554 = vrot.lane.b32.xlu1 %v1643_v44, %s1852_s17 }
 0x687   :  { %v1645_v49 = vpop.eup %1644 }
 0x688   :  { %v1647_v51 = vpop.eup %1646  ;;  %v536_v52 = vadd.f32 1.0, %v1645_v49 }
 0x689   :  { %v537_v54 = vadd.f32 1.0, %v1647_v51 }
 0x68a   :  { %1648 = vrcp.f32 %v536_v52 }
 0x68b   :  { %1650 = vrcp.f32 %v537_v54 }
 0x697   :  { %v1649_v55 = vpop.eup %1648 }
 0x698   :  { %v1651_v57 = vpop.eup %1650  ;;  %v548_v63 = vmul.f32 %v1649_v55, %v544_v61 }
 0x699   :  { %v549_v1 = vmul.f32 %v1651_v57, %v545_v62 }
 0x6f6   :  { %v553_v56 = vpop.permute.xlu0 %552 }
 0x6f7   :  { %v555_v58 = vpop.permute.xlu1 %554  ;;  %v558_v59 = vmul.f32 %v1649_v55, %v553_v56 }
 0x6f8   :  { %v559_v60 = vmul.f32 %v1651_v57, %v555_v58 }
 0x6f9   :  { %562 = vrot.lane.b32.xlu0 %v558_v59, %s1853_s3 }
 0x6fa   :  { %564 = vrot.lane.b32.xlu1 %v559_v60, %s1853_s3 }
 0x76b   :  { %v563_v2 = vpop.permute.xlu0 %562 }
 0x76c   :  { %v565_v4 = vpop.permute.xlu1 %564  ;;  %v2036_v7 = vadd.f32 %v563_v2, %v548_v63 }
 0x76d   :  { %v2038_v9 = vadd.f32 %v565_v4, %v549_v1 }
 0x76e   :  { %1652 = vtanh.f32 %v2036_v7  ;;  %v682_v46 = vrot.slane %v2036_v7, 7 }
 0x76f   :  { %1654 = vtanh.f32 %v2038_v9  ;;  %v683_v47 = vrot.slane %v2038_v9, 7 }
 0x77b   :  { %v1653_v10 = vpop.eup %1652 }
 0x77c   :  { %v1655_v11 = vpop.eup %1654  ;;  %574 = vrot.lane.b32.xlu0 %v1653_v10, %s1852_s17 }
 0x77d   :  { %576 = vrot.lane.b32.xlu1 %v1655_v11, %s1852_s17 }
 0x7ee   :  { %v575_v12 = vpop.permute.xlu0 %574 }
 0x7ef   :  { %v577_v13 = vpop.permute.xlu1 %576  ;;  %v580_v14 = vmul.f32 %v1649_v55, %v575_v12 }
 0x7f0   :  { %v581_v16 = vmul.f32 %v1651_v57, %v577_v13 }
 0x7f1   :  { %v584_v18 = vrot.slane %v580_v14, 2  ;;  %v2048_v19 = vsel %vm1275_vm5, %v1273_v15, %v580_v14 }
 0x7f2   :  { %v585_v21 = vrot.slane %v581_v16, 1  ;;  %v2050_v23 = vsel %vm1275_vm5, %v1274_v17, %v581_v16 }
 0x7f4   :  { %v586_v24 = vsel %vm311_vm2, %v585_v21, %v584_v18 }
 0x7f5   :  { %587 = vrot.lane.b32.xlu0 %v586_v24, %s1853_s3 }
 0x867   :  { %v588_v25 = vpop.permute.xlu0 %587 }
 0x868   :  { %1540 = vmatmul.mubr.msk.f32.vlgmr.msra.gmra.mxu1 %vm182_vm3, %v588_v25 }
 0x869   :  { %1554 = vmatpush3.msra.mxu1 %v1917_v3  ;;  %1561 = vmatprep.mubr.msk.f32.mxu1 %vm1851_vm0, %v1850_v0 }
 0x86a   :  { %1555 = vmatprep.subr.mxu1 %v1850_v0 }
 0x86b   :  { %1556 = vmatpush3.msra.mxu1 %v1920_v5 }
 0x86c   :  { %1557 = vmatprep.subr.mxu1 %v1850_v0 }
 0x86d   :  { %1558 = vmatpush3.msra.mxu1 %v1923_v6 }
 0x86e   :  { %1559 = vmatprep.subr.mxu1 %v1850_v0 }
 0x86f   :  { %1560 = vmatpush3.msra.mxu1 %v1927_v8 }
 0x870   :  { %1575 = vmatprep.subr.mxu1 %v1850_v0 }
 0x928   :  { %v657_v50 = vpop.f32.mrf.mxu1 }
 0x929   :  { %v662_v53 = vrot.slane %v657_v50, 5  ;;  %v663_v26 = vrot.slane %v657_v50, 6 }
 0x92a   :  { %v1541_v27 = vpop.f32.mrf.mxu1 }
 0x92b   :  { %v666_v28 = vadd.f32 %v662_v53, %v1962_v22  ;;  %v667_v29 = vadd.f32 %v663_v26, %v1960_v20 }
 0x92d   :  { %1656 = vtanh.f32 %v666_v28  ;;  %v668_v32 = vsub.f32 0.0, %v666_v28  ;;  %v669_v33 = vsub.f32 0.0, %v667_v29 }
 0x92e   :  { %1658 = vtanh.f32 %v667_v29 }
 0x92f   :  { %v670_v34 = vmul.f32 1.442695, %v668_v32  ;;  %v672_v35 = vmul.f32 1.442695, %v669_v33 }
 0x931   :  { %1660 = vpow2.f32 %v670_v34 }
 0x932   :  { %1662 = vpow2.f32 %v672_v35 }
 0x93a   :  { %v1657_v30 = vpop.eup %1656 }
 0x93b   :  { %v1659_v31 = vpop.eup %1658  ;;  %690 = vrot.lane.b32.xlu1 %v1657_v30, %s1852_s17 }
 0x93c   :  { %692 = vrot.lane.b32.xlu0 %v1659_v31, %s1852_s17 }
 0x93e   :  { %v1661_v36 = vpop.eup %1660 }
 0x93f   :  { %v1663_v37 = vpop.eup %1662  ;;  %v674_v38 = vadd.f32 1.0, %v1661_v36 }
 0x940   :  { %v675_v39 = vadd.f32 1.0, %v1663_v37 }
 0x941   :  { %1664 = vrcp.f32 %v674_v38 }
 0x942   :  { %1666 = vrcp.f32 %v675_v39 }
 0x94e   :  { %v1665_v40 = vpop.eup %1664 }
 0x94f   :  { %v1667_v42 = vpop.eup %1666  ;;  %v686_v48 = vmul.f32 %v1665_v40, %v682_v46 }
 0x950   :  { %v687_v49 = vmul.f32 %v1667_v42, %v683_v47 }
 0x9ad   :  { %v691_v41 = vpop.permute.xlu1 %690 }
 0x9ae   :  { %v693_v43 = vpop.permute.xlu0 %692  ;;  %v696_v44 = vmul.f32 %v1665_v40, %v691_v41 }
 0x9af   :  { %v697_v45 = vmul.f32 %v1667_v42, %v693_v43 }
 0x9b0   :  { %700 = vrot.lane.b32.xlu1 %v696_v44, %s1853_s3 }
 0x9b1   :  { %702 = vrot.lane.b32.xlu0 %v697_v45, %s1853_s3 }
 0xa22   :  { %v701_v51 = vpop.permute.xlu1 %700 }
 0xa23   :  { %v703_v52 = vpop.permute.xlu0 %702  ;;  %v2073_v54 = vadd.f32 %v701_v51, %v686_v48 }
 0xa24   :  { %v2075_v55 = vadd.f32 %v703_v52, %v687_v49 }
 0xa25   :  { %1668 = vtanh.f32 %v2073_v54  ;;  %v820_v31 = vrot.slane %v2073_v54, 7 }
 0xa26   :  { %1670 = vtanh.f32 %v2075_v55  ;;  %v821_v32 = vrot.slane %v2075_v55, 7 }
 0xa32   :  { %v1669_v56 = vpop.eup %1668 }
 0xa33   :  { %v1671_v57 = vpop.eup %1670  ;;  %712 = vrot.lane.b32.xlu1 %v1669_v56, %s1852_s17 }
 0xa34   :  { %714 = vrot.lane.b32.xlu0 %v1671_v57, %s1852_s17 }
 0xaa5   :  { %v713_v58 = vpop.permute.xlu1 %712 }
 0xaa6   :  { %v715_v59 = vpop.permute.xlu0 %714  ;;  %v718_v60 = vmul.f32 %v1665_v40, %v713_v58 }
 0xaa7   :  { %v719_v61 = vmul.f32 %v1667_v42, %v715_v59 }
 0xaa8   :  { %v722_v62 = vrot.slane %v718_v60, 3  ;;  %v2082_v63 = vsel %vm1278_vm6, %v2048_v19, %v718_v60 }
 0xaa9   :  { %v723_v1 = vrot.slane %v719_v61, 2  ;;  %v2085_v2 = vsel %vm1278_vm6, %v2050_v23, %v719_v61 }
 0xaab   :  { %v724_v4 = vsel %vm311_vm2, %v723_v1, %v722_v62 }
 0xaac   :  { %725 = vrot.lane.b32.xlu1 %v724_v4, %s1853_s3 }
 0xb1e   :  { %v726_v7 = vpop.permute.xlu1 %725 }
 0xb1f   :  { %1551 = vmatmul.mubr.msk.f32.vlgmr.msra.gmra.mxu0 %vm182_vm3, %v726_v7 }
 0xb20   :  { %1565 = vmatpush3.msra.mxu0 %v1917_v3  ;;  %1572 = vmatprep.mubr.msk.f32.mxu0 %vm1851_vm0, %v1850_v0 }
 0xb21   :  { %1566 = vmatprep.subr.mxu0 %v1850_v0 }
 0xb22   :  { %1567 = vmatpush3.msra.mxu0 %v1920_v5 }
 0xb23   :  { %1568 = vmatprep.subr.mxu0 %v1850_v0 }
 0xb24   :  { %1569 = vmatpush3.msra.mxu0 %v1923_v6 }
 0xb25   :  { %1570 = vmatprep.subr.mxu0 %v1850_v0 }
 0xb26   :  { %1571 = vmatpush3.msra.mxu0 %v1927_v8 }
 0xbdf   :  { %v795_v9 = vpop.f32.mrf.mxu0 }
 0xbe0   :  { %v800_v10 = vrot.slane %v795_v9, 4  ;;  %v801_v11 = vrot.slane %v795_v9, 5 }
 0xbe1   :  { %v1552_v12 = vpop.f32.mrf.mxu0 }
 0xbe2   :  { %v804_v13 = vadd.f32 %v800_v10, %v1962_v22  ;;  %v805_v14 = vadd.f32 %v801_v11, %v1960_v20 }
 0xbe4   :  { %1672 = vtanh.f32 %v804_v13  ;;  %v806_v17 = vsub.f32 0.0, %v804_v13  ;;  %v807_v18 = vsub.f32 0.0, %v805_v14 }
 0xbe5   :  { %1674 = vtanh.f32 %v805_v14 }
 0xbe6   :  { %v808_v19 = vmul.f32 1.442695, %v806_v17  ;;  %v810_v21 = vmul.f32 1.442695, %v807_v18 }
 0xbe8   :  { %1676 = vpow2.f32 %v808_v19 }
 0xbe9   :  { %1678 = vpow2.f32 %v810_v21 }
 0xbf1   :  { %v1673_v15 = vpop.eup %1672 }
 0xbf2   :  { %v1675_v16 = vpop.eup %1674  ;;  %828 = vrot.lane.b32.xlu0 %v1673_v15, %s1852_s17 }
 0xbf3   :  { %830 = vrot.lane.b32.xlu1 %v1675_v16, %s1852_s17 }
 0xbf5   :  { %v1677_v23 = vpop.eup %1676 }
 0xbf6   :  { %v1679_v24 = vpop.eup %1678  ;;  %v812_v25 = vadd.f32 1.0, %v1677_v23 }
 0xbf7   :  { %v813_v50 = vadd.f32 1.0, %v1679_v24 }
 0xbf8   :  { %1680 = vrcp.f32 %v812_v25 }
 0xbf9   :  { %1682 = vrcp.f32 %v813_v50 }
 0xc05   :  { %v1681_v53 = vpop.eup %1680 }
 0xc06   :  { %v1683_v27 = vpop.eup %1682  ;;  %v824_v33 = vmul.f32 %v1681_v53, %v820_v31 }
 0xc07   :  { %v825_v34 = vmul.f32 %v1683_v27, %v821_v32 }
 0xc64   :  { %v829_v26 = vpop.permute.xlu0 %828 }
 0xc65   :  { %v831_v28 = vpop.permute.xlu1 %830  ;;  %v834_v29 = vmul.f32 %v1681_v53, %v829_v26 }
 0xc66   :  { %v835_v30 = vmul.f32 %v1683_v27, %v831_v28 }
 0xc67   :  { %838 = vrot.lane.b32.xlu0 %v834_v29, %s1853_s3 }
 0xc68   :  { %840 = vrot.lane.b32.xlu1 %v835_v30, %s1853_s3 }
 0xcd9   :  { %v839_v35 = vpop.permute.xlu0 %838 }
 0xcda   :  { %v841_v36 = vpop.permute.xlu1 %840  ;;  %v2107_v37 = vadd.f32 %v839_v35, %v824_v33 }
 0xcdb   :  { %v2109_v38 = vadd.f32 %v841_v36, %v825_v34 }
 0xcdc   :  { %1684 = vtanh.f32 %v2107_v37  ;;  %v958_v11 = vrot.slane %v2107_v37, 7 }
 0xcdd   :  { %1686 = vtanh.f32 %v2109_v38  ;;  %v959_v12 = vrot.slane %v2109_v38, 7 }
 0xce9   :  { %v1685_v39 = vpop.eup %1684 }
 0xcea   :  { %v1687_v40 = vpop.eup %1686  ;;  %850 = vrot.lane.b32.xlu0 %v1685_v39, %s1852_s17 }
 0xceb   :  { %852 = vrot.lane.b32.xlu1 %v1687_v40, %s1852_s17 }
 0xd5c   :  { %v851_v41 = vpop.permute.xlu0 %850 }
 0xd5d   :  { %v853_v42 = vpop.permute.xlu1 %852  ;;  %v856_v43 = vmul.f32 %v1681_v53, %v851_v41 }
 0xd5e   :  { %v857_v44 = vmul.f32 %v1683_v27, %v853_v42 }
 0xd5f   :  { %v860_v45 = vrot.slane %v856_v43, 4  ;;  %v2116_v46 = vsel %vm1281_vm7, %v2082_v63, %v856_v43 }
 0xd60   :  { %v861_v47 = vrot.slane %v857_v44, 3  ;;  %v2119_v48 = vsel %vm1281_vm7, %v2085_v2, %v857_v44 }
 0xd62   :  { %v862_v49 = vsel %vm311_vm2, %v861_v47, %v860_v45 }
 0xd63   :  { %863 = vrot.lane.b32.xlu0 %v862_v49, %s1853_s3 }
 0xdd5   :  { %v864_v51 = vpop.permute.xlu0 %863 }
 0xdd6   :  { %1562 = vmatmul.mubr.msk.f32.vlgmr.msra.gmra.mxu1 %vm182_vm3, %v864_v51 }
 0xdd7   :  { %1576 = vmatpush3.msra.mxu1 %v1917_v3  ;;  %1583 = vmatprep.mubr.msk.f32.mxu1 %vm1851_vm0, %v1850_v0 }
 0xdd8   :  { %1577 = vmatprep.subr.mxu1 %v1850_v0 }
 0xdd9   :  { %1578 = vmatpush3.msra.mxu1 %v1920_v5 }
 0xdda   :  { %1579 = vmatprep.subr.mxu1 %v1850_v0 }
 0xddb   :  { %1580 = vmatpush3.msra.mxu1 %v1923_v6 }
 0xddc   :  { %1581 = vmatprep.subr.mxu1 %v1850_v0 }
 0xddd   :  { %1582 = vmatpush3.msra.mxu1 %v1927_v8 }
 0xe96   :  { %v933_v52 = vpop.f32.mrf.mxu1 }
 0xe97   :  { %v938_v54 = vrot.slane %v933_v52, 3  ;;  %v939_v55 = vrot.slane %v933_v52, 4 }
 0xe98   :  { %v1563_v56 = vpop.f32.mrf.mxu1 }
 0xe99   :  { %v942_v3 = vadd.f32 %v938_v54, %v1962_v22  ;;  %v943_v57 = vadd.f32 %v939_v55, %v1960_v20 }
 0xe9b   :  { %1688 = vtanh.f32 %v942_v3  ;;  %v944_v6 = vsub.f32 0.0, %v942_v3  ;;  %v945_v0 = vsub.f32 0.0, %v943_v57 }
 0xe9c   :  { %1690 = vtanh.f32 %v943_v57 }
 0xe9d   :  { %v946_v59 = vmul.f32 1.442695, %v944_v6  ;;  %v948_v8 = vmul.f32 1.442695, %v945_v0 }
 0xe9f   :  { %1692 = vpow2.f32 %v946_v59 }
 0xea0   :  { %1694 = vpow2.f32 %v948_v8 }
 0xea8   :  { %v1689_v58 = vpop.eup %1688 }
 0xea9   :  { %v1691_v5 = vpop.eup %1690  ;;  %966 = vrot.lane.b32.xlu1 %v1689_v58, %s1852_s17 }
 0xeaa   :  { %968 = vrot.lane.b32.xlu0 %v1691_v5, %s1852_s17 }
 0xeac   :  { %v1693_v60 = vpop.eup %1692 }
 0xead   :  { %v1695_v61 = vpop.eup %1694  ;;  %v950_v62 = vadd.f32 1.0, %v1693_v60 }
 0xeae   :  { %v951_v63 = vadd.f32 1.0, %v1695_v61 }
 0xeaf   :  { %1696 = vrcp.f32 %v950_v62 }
 0xeb0   :  { %1698 = vrcp.f32 %v951_v63 }
 0xebc   :  { %v1697_v1 = vpop.eup %1696 }
 0xebd   :  { %v1699_v4 = vpop.eup %1698  ;;  %v962_v13 = vmul.f32 %v1697_v1, %v958_v11 }
 0xebe   :  { %v963_v14 = vmul.f32 %v1699_v4, %v959_v12 }
 0xf1b   :  { %v967_v2 = vpop.permute.xlu1 %966 }
 0xf1c   :  { %v969_v7 = vpop.permute.xlu0 %968  ;;  %v972_v9 = vmul.f32 %v1697_v1, %v967_v2 }
 0xf1d   :  { %v973_v10 = vmul.f32 %v1699_v4, %v969_v7 }
 0xf1e   :  { %976 = vrot.lane.b32.xlu1 %v972_v9, %s1853_s3 }
 0xf1f   :  { %978 = vrot.lane.b32.xlu0 %v973_v10, %s1853_s3 }
 0xf90   :  { %v977_v15 = vpop.permute.xlu1 %976 }
 0xf91   :  { %v979_v16 = vpop.permute.xlu0 %978  ;;  %v982_v17 = vadd.f32 %v977_v15, %v962_v13 }
 0xf92   :  { %v983_v18 = vadd.f32 %v979_v16, %v963_v14 }
 0xf93   :  { %1700 = vtanh.f32 %v982_v17  ;;  %v1096_v55 = vrot.slane %v982_v17, 7 }
 0xf94   :  { %1702 = vtanh.f32 %v983_v18  ;;  %v1097_v56 = vrot.slane %v983_v18, 7 }
 0xfa0   :  { %v1701_v19 = vpop.eup %1700 }
 0xfa1   :  { %v1703_v21 = vpop.eup %1702  ;;  %988 = vrot.lane.b32.xlu1 %v1701_v19, %s1852_s17 }
 0xfa2   :  { %990 = vrot.lane.b32.xlu0 %v1703_v21, %s1852_s17 }
0x1013   :  { %v989_v23 = vpop.permute.xlu1 %988 }
0x1014   :  { %v991_v24 = vpop.permute.xlu0 %990  ;;  %v994_v25 = vmul.f32 %v1697_v1, %v989_v23 }
0x1015   :  { %v995_v50 = vmul.f32 %v1699_v4, %v991_v24 }
0x1016   :  { %v998_v53 = vrot.slane %v994_v25, 5  ;;  %v1285_v26 = vsel %vm1284_vm8, %v2116_v46, %v994_v25 }
0x1017   :  { %v999_v27 = vrot.slane %v995_v50, 4  ;;  %v1286_v28 = vsel %vm1284_vm8, %v2119_v48, %v995_v50 }
0x1019   :  { %v1000_v29 = vsel %vm311_vm2, %v999_v27, %v998_v53 }
0x101a   :  { %1001 = vrot.lane.b32.xlu1 %v1000_v29, %s1853_s3 }
0x108c   :  { %v1002_v30 = vpop.permute.xlu1 %1001 }
0x108d   :  { %1573 = vmatmul.mubr.msk.f32.vlgmr.msra.gmra.mxu0 %vm182_vm3, %v1002_v30 }
0x114d   :  { %v1071_v31 = vpop.f32.mrf.mxu0 }
0x114e   :  { %v1076_v32 = vrot.slane %v1071_v31, 2  ;;  %v1077_v33 = vrot.slane %v1071_v31, 3 }
0x114f   :  { %v1574_v34 = vpop.f32.mrf.mxu0 }
0x1150   :  { %v1080_v35 = vadd.f32 %v1076_v32, %v1962_v22  ;;  %v1081_v36 = vadd.f32 %v1077_v33, %v1960_v20 }
0x1152   :  { %1704 = vtanh.f32 %v1080_v35  ;;  %v1082_v39 = vsub.f32 0.0, %v1080_v35  ;;  %v1083_v40 = vsub.f32 0.0, %v1081_v36 }
0x1153   :  { %1706 = vtanh.f32 %v1081_v36 }
0x1154   :  { %v1084_v41 = vmul.f32 1.442695, %v1082_v39  ;;  %v1086_v42 = vmul.f32 1.442695, %v1083_v40  ;;  %v1296_v39 = vld [vmem:[#allocation8 + $0x18] sm:$0xff]  ;;  %v1295_v40 = vld [vmem:[#allocation8 + $0x10] sm:$0xff] }
0x1155   :  { %1586 = vmatprep.subr.mxu0 %v1296_v39 }
0x1156   :  { %1708 = vpow2.f32 %v1084_v41  ;;  %1587 = vmatpush3.msra.mxu0 %v1296_v39  ;;  %v1294_v41 = vld [vmem:[#allocation8 + $0x8] sm:$0xff] }
0x1157   :  { %1710 = vpow2.f32 %v1086_v42  ;;  %1588 = vmatprep.subr.mxu0 %v1295_v40  ;;  %v1293_v42 = vld [vmem:[#allocation8] sm:$0xff] }
0x1158   :  { %1589 = vmatpush3.msra.mxu0 %v1295_v40 }
0x1159   :  { %1590 = vmatprep.subr.mxu0 %v1294_v41 }
0x115a   :  { %1591 = vmatpush3.msra.mxu0 %v1294_v41 }
0x115b   :  { %1592 = vmatprep.subr.mxu0 %v1293_v42 }
0x115c   :  { %1593 = vmatpush3.msra.mxu0 %v1293_v42 }
0x115f   :  { %v1705_v37 = vpop.eup %1704 }
0x1160   :  { %v1707_v38 = vpop.eup %1706  ;;  %1104 = vrot.lane.b32.xlu0 %v1705_v37, %s1852_s17 }
0x1161   :  { %1106 = vrot.lane.b32.xlu1 %v1707_v38, %s1852_s17 }
0x1163   :  { %v1709_v43 = vpop.eup %1708 }
0x1164   :  { %v1711_v44 = vpop.eup %1710  ;;  %v1088_v45 = vadd.f32 1.0, %v1709_v43 }
0x1165   :  { %v1089_v46 = vadd.f32 1.0, %v1711_v44 }
0x1166   :  { %1712 = vrcp.f32 %v1088_v45 }
0x1167   :  { %1714 = vrcp.f32 %v1089_v46 }
0x1173   :  { %v1713_v47 = vpop.eup %1712 }
0x1174   :  { %v1715_v49 = vpop.eup %1714  ;;  %v1100_v3 = vmul.f32 %v1713_v47, %v1096_v55  ;;  %v1420_v55 = vld [vmem:[%s2191_s5] ss:$0 sm:$0xff] }
0x1175   :  { %v1101_v57 = vmul.f32 %v1715_v49, %v1097_v56 }
0x11d2   :  { %v1105_v48 = vpop.permute.xlu0 %1104 }
0x11d3   :  { %v1107_v51 = vpop.permute.xlu1 %1106  ;;  %v1110_v52 = vmul.f32 %v1713_v47, %v1105_v48 }
0x11d4   :  { %v1111_v54 = vmul.f32 %v1715_v49, %v1107_v51 }
0x11d5   :  { %1114 = vrot.lane.b32.xlu0 %v1110_v52, %s1853_s3 }
0x11d6   :  { %1116 = vrot.lane.b32.xlu1 %v1111_v54, %s1853_s3 }
0x1247   :  { %v1115_v58 = vpop.permute.xlu0 %1114 }
0x1248   :  { %v1117_v5 = vpop.permute.xlu1 %1116  ;;  %v1120_v6 = vadd.f32 %v1115_v58, %v1100_v3 }
0x1249   :  { %v1121_v0 = vadd.f32 %v1117_v5, %v1101_v57 }
0x124a   :  { %1716 = vtanh.f32 %v1120_v6  ;;  %v1234_v31 = vrot.slane %v1120_v6, 7 }
0x124b   :  { %1718 = vtanh.f32 %v1121_v0  ;;  %v1235_v32 = vrot.slane %v1121_v0, 7 }
0x1257   :  { %v1717_v59 = vpop.eup %1716 }
0x1258   :  { %v1719_v8 = vpop.eup %1718  ;;  %1126 = vrot.lane.b32.xlu0 %v1717_v59, %s1852_s17 }
0x1259   :  { %1128 = vrot.lane.b32.xlu1 %v1719_v8, %s1852_s17 }
0x12ca   :  { %v1127_v60 = vpop.permute.xlu0 %1126 }
0x12cb   :  { %v1129_v61 = vpop.permute.xlu1 %1128  ;;  %v1132_v62 = vmul.f32 %v1713_v47, %v1127_v60 }
0x12cc   :  { %v1133_v63 = vmul.f32 %v1715_v49, %v1129_v61 }
0x12cd   :  { %v1136_v1 = vrot.slane %v1132_v62, 6  ;;  %v2156_v2 = vsel %vm1287_vm9, %v1285_v26, %v1132_v62 }
0x12ce   :  { %v1137_v4 = vrot.slane %v1133_v63, 5  ;;  %v2158_v7 = vsel %vm1287_vm9, %v1286_v28, %v1133_v63 }
0x12d0   :  { %v1138_v9 = vsel %vm311_vm2, %v1137_v4, %v1136_v1 }
0x12d1   :  { %1139 = vrot.lane.b32.xlu0 %v1138_v9, %s1853_s3 }
0x1343   :  { %v1140_v10 = vpop.permute.xlu0 %1139 }
0x1344   :  { %1584 = vmatmul.mubr.msk.f32.vlgmr.msra.gmra.mxu1 %vm182_vm3, %v1140_v10 }
0x1404   :  { %v1209_v11 = vpop.f32.mrf.mxu1 }
0x1405   :  { %v1214_v12 = vrot.slane %v1209_v11, 1  ;;  %v1215_v13 = vrot.slane %v1209_v11, 2 }
0x1406   :  { %v1585_v14 = vpop.f32.mrf.mxu1 }
0x1407   :  { %v1218_v15 = vadd.f32 %v1214_v12, %v1962_v22  ;;  %v1219_v16 = vadd.f32 %v1215_v13, %v1960_v20 }
0x1409   :  { %1720 = vtanh.f32 %v1218_v15  ;;  %v1220_v19 = vsub.f32 0.0, %v1218_v15  ;;  %v1221_v21 = vsub.f32 0.0, %v1219_v16 }
0x140a   :  { %1722 = vtanh.f32 %v1219_v16 }
0x140b   :  { %v1222_v23 = vmul.f32 1.442695, %v1220_v19  ;;  %v1224_v24 = vmul.f32 1.442695, %v1221_v21 }
0x140d   :  { %1724 = vpow2.f32 %v1222_v23 }
0x140e   :  { %1726 = vpow2.f32 %v1224_v24 }
0x1416   :  { %v1721_v17 = vpop.eup %1720 }
0x1417   :  { %v1723_v18 = vpop.eup %1722  ;;  %1242 = vrot.lane.b32.xlu1 %v1721_v17, %s1852_s17 }
0x1418   :  { %1244 = vrot.lane.b32.xlu0 %v1723_v18, %s1852_s17 }
0x141a   :  { %v1725_v25 = vpop.eup %1724 }
0x141b   :  { %v1727_v50 = vpop.eup %1726  ;;  %v1226_v53 = vadd.f32 1.0, %v1725_v25 }
0x141c   :  { %v1227_v22 = vadd.f32 1.0, %v1727_v50 }
0x141d   :  { %1728 = vrcp.f32 %v1226_v53 }
0x141e   :  { %1730 = vrcp.f32 %v1227_v22 }
0x142a   :  { %v1729_v20 = vpop.eup %1728 }
0x142b   :  { %v1731_v27 = vpop.eup %1730  ;;  %v1238_v33 = vmul.f32 %v1729_v20, %v1234_v31 }
0x142c   :  { %v1239_v34 = vmul.f32 %v1731_v27, %v1235_v32 }
0x1489   :  { %v1243_v26 = vpop.permute.xlu1 %1242 }
0x148a   :  { %v1245_v28 = vpop.permute.xlu0 %1244  ;;  %v1248_v29 = vmul.f32 %v1729_v20, %v1243_v26 }
0x148b   :  { %v1249_v30 = vmul.f32 %v1731_v27, %v1245_v28 }
0x148c   :  { %1252 = vrot.lane.b32.xlu1 %v1248_v29, %s1853_s3 }
0x148d   :  { %1254 = vrot.lane.b32.xlu0 %v1249_v30, %s1853_s3 }
0x14fe   :  { %v1253_v35 = vpop.permute.xlu1 %1252 }
0x14ff   :  { %v1255_v36 = vpop.permute.xlu0 %1254  ;;  %v1258_v37 = vadd.f32 %v1253_v35, %v1238_v33 }
0x1500   :  { %v1259_v38 = vadd.f32 %v1255_v36, %v1239_v34 }
0x1501   :  { %1732 = vtanh.f32 %v1258_v37 }
0x1502   :  { %1734 = vtanh.f32 %v1259_v38 }
0x150e   :  { %v1733_v43 = vpop.eup %1732 }
0x150f   :  { %v1735_v44 = vpop.eup %1734  ;;  %1264 = vrot.lane.b32.xlu1 %v1733_v43, %s1852_s17 }
0x1510   :  { %1266 = vrot.lane.b32.xlu0 %v1735_v44, %s1852_s17 }
0x1581   :  { %v1265_v45 = vpop.permute.xlu1 %1264 }
0x1582   :  { %v1267_v46 = vpop.permute.xlu0 %1266  ;;  %v1270_v47 = vmul.f32 %v1729_v20, %v1265_v45 }
0x1583   :  { %v1271_v48 = vmul.f32 %v1731_v27, %v1267_v46 }
0x1584   :  { %v1291_v49 = vsel %vm1290_vm10, %v2156_v2, %v1270_v47 }
0x1585   :  { %v1292_v51 = vsel %vm1290_vm10, %v2158_v7, %v1271_v48  ;;  %1306 = vrot.lane.b32.xlu1 %v1291_v49, %s1853_s3 }
0x1586   :  { %1308 = vrot.lane.b32.xlu0 %v1292_v51, %s1853_s3 }
0x15f7   :  { %v1307_v52 = vpop.permute.xlu1 %1306 }
0x15f8   :  { %v1309_v54 = vpop.permute.xlu0 %1308  ;;  %1594 = vmatprep.mubr.msk.f32.mxu0 %vm182_vm3, %v1307_v52 }
0x15f9   :  { %1595 = vmatmul.mubr.msk.f32.vlgmr.msra.gmra.mxu0 %vm182_vm3, %v1309_v54 }
0x16b9   :  { %v1596_v56 = vpop.f32.mrf.mxu0 }
0x16ba   :  { %v1386_v3 = vadd.f32 %v1596_v56, %v1420_v55 }
0x16bb   :  { %v1380_v57 = vpop.f32.mrf.mxu0 }
0x16bc   :  { %1390 = vst [vmem:[#allocation10 + $0x8] sm:$0xff] %v1386_v3  ;;  %v1381_v58 = vadd.f32 %v1420_v55, %v1380_v57 }
0x16be   :  { %1389 = vst [vmem:[#allocation10] sm:$0xff] %v1381_v58 }
0x16bf   :  { %1827 = shalt.err (!%p1824_p10)
}
0x16c0   :  { %1402 = dma.vmem_to_hbm [thread:$0]  %s1397_s21, 256, %s2192_s6, [#allocation4], %s1846_s26, %s1846_s26, %s1847_s27  }
0x16c1   :  { %1842 = dma.done.wait [#allocation4], 256  }
0x16c2   :  { %1843 = vsyncadd [#allocation4], 4294967040 }
0x16c3   :  { %1406 = vsyncpa [#allocation3], 1 }
0x16c4   :  { %1407 = vsyncpa [#allocation6], 1 }
0x16c5   :  { %1408 = vsyncpa [#allocation9], 1 }
0x16c6   :  { %1409 = vsyncpa [#allocation4], 1 }

</bundles_post_ra>
